<compile_context>
chip_gen: v5e
topology: v5e:2x2
jax: 0.10.0
libtpu: 0.0.40
codegen_flags: <defaults>
</compile_context>

<pallas_src>
import functools
import math

import jax
import jax.numpy as jnp
from jax.experimental import pallas as pl
from jax.experimental.pallas import tpu as pltpu

architecture_config = [
    (7, 64, 2, 3), 'm', (3, 192, 1, 1), 'm', (1, 128, 1, 0), (3, 256, 1, 1),
    (1, 256, 1, 0), (3, 512, 1, 1), 'm', [(1, 256, 1, 0), (3, 512, 1, 1), 4],
    (1, 512, 1, 0), (3, 1024, 1, 1), 'm', [(1, 512, 1, 0), (3, 1024, 1, 1), 2],
    (3, 1024, 1, 1), (3, 1024, 2, 1), (3, 1024, 1, 1), (3, 1024, 1, 1),
]


def _round_up(x, m):
    return (x + m - 1) // m * m


def _pick_tile(d, cap):
    """Largest 128-multiple tile <= cap that divides d (d is a 128-multiple)."""
    cap = max(128, (cap // 128) * 128)
    t = min(d, cap)
    while d % t != 0:
        t -= 128
    return t


def _largest_divisor(d, cap):
    t = min(d, cap)
    while d % t:
        t -= 1
    return t


# ----------------------------------------------------------------------------
# Fused matmul + bias + optional LeakyReLU(0.1).  bf16 operands on the MXU,
# f32 VMEM accumulator.  BN scale is pre-folded into the weights.
# ----------------------------------------------------------------------------
def _fused_mm_kernel(x_ref, w_ref, b_ref, o_ref, acc_ref, *, leaky):
    k = pl.program_id(2)

    @pl.when(k == 0)
    def _():
        acc_ref[...] = jnp.zeros_like(acc_ref)

    acc_ref[...] += jnp.dot(x_ref[...], w_ref[...],
                            preferred_element_type=jnp.float32)

    @pl.when(k == pl.num_programs(2) - 1)
    def _():
        y = acc_ref[...] + b_ref[...]
        if leaky:
            y = jnp.where(y >= 0, y, 0.1 * y)
        o_ref[...] = y.astype(o_ref.dtype)


def fused_matmul(x, w, bias, *, leaky, out_dtype, n_valid):
    """out = [leakyrelu]( x @ w + bias )[:, :n_valid].

    `w` is pre-packed (Kp, Np) bf16 with Np a 128-multiple (scale folded in);
    `bias` is (1, Np) f32.  x's M (and K, if the weight K was padded) is padded
    here.
    """
    M, K = x.shape
    Kp, Np = w.shape
    assert K <= Kp

    small_m = M <= 64                      # FC / 1x1-spatial: weight streaming
    tm = min(_round_up(M, 16), 512)
    Mp = _round_up(M, tm)
    n_cap = 2048 if small_m else 512
    tn = _pick_tile(Np, min(n_cap, max(128, Np // 2)))   # keep >=2 N blocks when possible
    tk_cap = 2048 if small_m else 1024
    tk = Kp if Kp <= tk_cap else _pick_tile(Kp, tk_cap)

    xb = x.astype(jnp.bfloat16)
    if Mp != M or Kp != K:
        xb = jnp.pad(xb, ((0, Mp - M), (0, Kp - K)))

    grid = (Mp // tm, Np // tn, Kp // tk)
    out = pl.pallas_call(
        functools.partial(_fused_mm_kernel, leaky=leaky),
        out_shape=jax.ShapeDtypeStruct((Mp, Np), out_dtype),
        grid_spec=pltpu.PrefetchScalarGridSpec(
            num_scalar_prefetch=0,
            grid=grid,
            in_specs=[
                pl.BlockSpec((tm, tk), lambda i, j, k: (i, k)),
                pl.BlockSpec((tk, tn), lambda i, j, k: (k, j)),
                pl.BlockSpec((1, tn), lambda i, j, k: (0, j)),
            ],
            out_specs=pl.BlockSpec((tm, tn), lambda i, j, k: (i, j)),
            scratch_shapes=[pltpu.VMEM((tm, tn), jnp.float32)],
        ),
        compiler_params=pltpu.CompilerParams(
            dimension_semantics=("parallel", "parallel", "arbitrary")),
        cost_estimate=pl.CostEstimate(
            flops=2 * Mp * Kp * Np,
            transcendentals=0,
            bytes_accessed=Mp * Kp * 2 + Kp * Np * 2 + Np * 4
            + Mp * Np * jnp.dtype(out_dtype).itemsize),
    )(xb, w, bias)
    return out[:M, :n_valid]


# ----------------------------------------------------------------------------
# KxK stride-1 conv + (folded BN) bias + LeakyReLU without materialized im2col.
# The bf16 padded image is flattened to rows (h*Wp + w, Cin) and kept resident
# in VMEM; each tap (kh, kw) is a dynamic row-slice whose matmul is accumulated
# over the "arbitrary" tap grid axis.  Output rows with w >= OW are garbage and
# are dropped by the wrapper-side compaction slice.
# ----------------------------------------------------------------------------
def _conv_s1_kernel(x_ref, w_ref, b_ref, o_ref, acc_ref, *, KW, Wp):
    t = pl.program_id(1)

    @pl.when(t == 0)
    def _():
        acc_ref[...] = jnp.zeros_like(acc_ref)

    kh = t // KW
    kw = t - kh * KW
    start = kh * Wp + kw
    mb = acc_ref.shape[0]
    patch = x_ref[pl.ds(start, mb), :]                     # (mb, Cin) bf16
    acc_ref[...] += jnp.dot(patch, w_ref[0],
                            preferred_element_type=jnp.float32)

    @pl.when(t == pl.num_programs(1) - 1)
    def _():
        y = acc_ref[...] + b_ref[...]
        o_ref[...] = jnp.where(y >= 0, y, 0.1 * y).astype(o_ref.dtype)


def conv_kxk_s1(x, layer):
    k, p, cout = layer['k'], layer['pad'], layer['cout']
    n, h, w_in, cin = x.shape
    oh = h + 2 * p - k + 1
    ow = w_in + 2 * p - k + 1
    hp, wp = h + 2 * p, w_in + 2 * p
    P = hp * wp                      # flattened row pitch per image
    G = oh * wp                      # rows containing valid outputs (per image)
    start_max = (k - 1) * wp + (k - 1)
    mb = _round_up((n - 1) * P + G, 8)       # matmul rows (whole batch at once)
    rtot = _round_up(start_max + mb, 8)      # resident x rows (incl. tail zeros)

    xp = jnp.pad(x.astype(jnp.bfloat16), ((0, 0), (p, p), (p, p), (0, 0)))
    x2 = xp.reshape(n * P, cin)
    x2 = jnp.pad(x2, ((0, rtot - n * P), (0, 0)))

    wgt = layer['w']                         # (k*k, cin, coutp) bf16, scale folded
    coutp = wgt.shape[-1]
    tn = _pick_tile(coutp, min(512, max(128, coutp // 2)))
    grid = (coutp // tn, k * k)

    out = pl.pallas_call(
        functools.partial(_conv_s1_kernel, KW=k, Wp=wp),
        out_shape=jax.ShapeDtypeStruct((mb, coutp), jnp.bfloat16),
        grid_spec=pltpu.PrefetchScalarGridSpec(
            num_scalar_prefetch=0,
            grid=grid,
            in_specs=[
                pl.BlockSpec((rtot, cin), lambda j, t: (0, 0)),      # resident
                pl.BlockSpec((1, cin, tn), lambda j, t: (t, 0, j)),
                pl.BlockSpec((1, tn), lambda j, t: (0, j)),
            ],
            out_specs=pl.BlockSpec((mb, tn), lambda j, t: (0, j)),
            scratch_shapes=[pltpu.VMEM((mb, tn), jnp.float32)],
        ),
        compiler_params=pltpu.CompilerParams(
            dimension_semantics=("parallel", "arbitrary")),
        cost_estimate=pl.CostEstimate(
            flops=2 * mb * cin * coutp * k * k,
            transcendentals=0,
            bytes_accessed=rtot * cin * 2 + k * k * cin * coutp * 2
            + coutp * 4 + mb * coutp * 2),
    )(x2, wgt, layer['bias'])

    full = n * P
    if mb < full:
        out = jnp.pad(out, ((0, full - mb), (0, 0)))
    else:
        out = out[:full]
    y = out.reshape(n, hp, wp, coutp)[:, :oh, :ow, :cout]
    return y                                  # NHWC bf16


# ----------------------------------------------------------------------------
# 1x1 conv: a pure (rows, Cin) x (Cin, Cout) fused matmul (zero im2col cost).
# ----------------------------------------------------------------------------
def conv1x1(x, layer):
    n, h, w, cin = x.shape
    rows = x.reshape(n * h * w, cin)
    y = fused_matmul(rows, layer['w'], layer['bias'],
                     leaky=True, out_dtype=jnp.bfloat16, n_valid=layer['cout'])
    return y.reshape(n, h, w, layer['cout'])


# ----------------------------------------------------------------------------
# Strided (stride>1) convs: NHWC slab-concat im2col (no 5-D transpose) feeding
# the fused bf16 matmul.  Only the 7x7/2 stem and the single 3x3/2 layer use it.
# ----------------------------------------------------------------------------
def conv_im2col(x, layer):
    k, s, p, cout = layer['k'], layer['stride'], layer['pad'], layer['cout']
    n, h, w_in, cin = x.shape
    oh = (h + 2 * p - k) // s + 1
    ow = (w_in + 2 * p - k) // s + 1
    xp = jnp.pad(x.astype(jnp.bfloat16), ((0, 0), (p, p), (p, p), (0, 0)))
    slabs = [xp[:, i:i + s * oh:s, j:j + s * ow:s, :]
             for i in range(k) for j in range(k)]
    patches = jnp.concatenate(slabs, axis=-1).reshape(n * oh * ow, k * k * cin)
    y = fused_matmul(patches, layer['w'], layer['bias'],
                     leaky=True, out_dtype=jnp.bfloat16, n_valid=cout)
    return y.reshape(n, oh, ow, cout)


# ----------------------------------------------------------------------------
# MaxPool 2x2 stride 2: gridded Pallas kernel over NHWC, C on the lane axis.
# Up to 32 output rows per grid step (single step at these shapes) so the op is
# not per-step-overhead bound; the W-pair reduction folds the W parity into the
# channel dim via a free reshape, so no strided HBM views are materialized.
# ----------------------------------------------------------------------------
def _maxpool_kernel(x_ref, o_ref, *, C):
    x = x_ref[...]                        # (R, 2, OW, 2*C)
    m = jnp.maximum(x[:, 0], x[:, 1])     # (R, OW, 2*C)
    o_ref[...] = jnp.maximum(m[..., :C], m[..., C:])


def maxpool2x2(x):
    n, h, w, c = x.shape
    assert h % 2 == 0 and w % 2 == 0
    oh, ow = h // 2, w // 2
    rows = n * oh
    R = _largest_divisor(rows, 32)                # >= 8 rows/step where possible
    x5 = x.reshape(rows, 2, ow, 2 * c)            # free reshape of NHWC
    out = pl.pallas_call(
        functools.partial(_maxpool_kernel, C=c),
        out_shape=jax.ShapeDtypeStruct((rows, ow, c), x.dtype),
        grid_spec=pltpu.PrefetchScalarGridSpec(
            num_scalar_prefetch=0,
            grid=(rows // R,),
            in_specs=[pl.BlockSpec((R, 2, ow, 2 * c), lambda i: (i, 0, 0, 0))],
            out_specs=pl.BlockSpec((R, ow, c), lambda i: (i, 0, 0)),
        ),
        compiler_params=pltpu.CompilerParams(dimension_semantics=("parallel",)),
    )(x5)
    return out.reshape(n, oh, ow, c)


# ----------------------------------------------------------------------------
# Deterministic parameter construction (mirrors YOLOV1.__init__ shapes), with
# all packing (HWIO transpose, BN-scale folding, lane padding, bf16 cast, fc1
# NHWC permutation, stem K padding) hoisted to build time.
# ----------------------------------------------------------------------------
def _expanded_arch():
    out = []
    for spec in architecture_config:
        if isinstance(spec, tuple):
            out.append(spec)
        elif isinstance(spec, str):
            out.append('m')
        elif isinstance(spec, list):
            c1, c2, rep = spec
            for _ in range(rep):
                out.append(c1)
                out.append(c2)
    return out


def build_params(key, in_channels=3, grid=1, num_boxes=2, num_classes=3):
    eps = 1e-5
    layers = []
    cin = in_channels
    for spec in _expanded_arch():
        if spec == 'm':
            layers.append({'kind': 'pool'})
            continue
        k, cout, stride, pad = spec
        key, kw_, kg_, kb_ = jax.random.split(key, 4)
        w = jax.random.normal(kw_, (cout, cin, k, k), jnp.float32)
        w = w * math.sqrt(2.0 / (cin * k * k))
        gamma = 1.0 + 0.1 * jax.random.normal(kg_, (cout,), jnp.float32)
        beta = 0.1 * jax.random.normal(kb_, (cout,), jnp.float32)
        running_mean = jnp.zeros((cout,), jnp.float32)
        running_var = jnp.ones((cout,), jnp.float32)
        scale = gamma / jnp.sqrt(running_var + eps)
        bias = beta - running_mean * scale

        coutp = _round_up(cout, 128)
        bias_p = jnp.pad(bias, (0, coutp - cout)).reshape(1, coutp)
        # Fold BN scale into the weights in f32, then pad + cast to bf16.
        hwio = jnp.transpose(w, (2, 3, 1, 0)) * scale            # (k,k,cin,cout)
        hwio_p = jnp.pad(hwio, ((0, 0), (0, 0), (0, 0),
                                (0, coutp - cout))).astype(jnp.bfloat16)

        layer = {'k': k, 'stride': stride, 'pad': pad, 'cout': cout, 'cin': cin,
                 'bias': bias_p.astype(jnp.float32)}
        if k == 1 and stride == 1:
            layer['kind'] = 'conv1x1'
            layer['w'] = hwio_p.reshape(cin, coutp)
        elif stride == 1:
            layer['kind'] = 'conv_s1'
            layer['w'] = hwio_p.reshape(k * k, cin, coutp)
        else:
            layer['kind'] = 'conv_im2col'
            K = k * k * cin
            wm = hwio_p.reshape(K, coutp)
            Kpad = _round_up(K, 128)              # e.g. 7x7 stem: 147 -> 256
            if Kpad != K:
                wm = jnp.pad(wm, ((0, Kpad - K), (0, 0)))
            layer['w'] = wm
        layers.append(layer)
        cin = cout

    S, B, C = grid, num_boxes, num_classes
    d_in = 1024 * S * S
    d_out = S * S * (C + B * 5)
    key, k1, k2, k3, k4 = jax.random.split(key, 5)
    fc1_w = jax.random.normal(k1, (4096, d_in), jnp.float32) * math.sqrt(2.0 / d_in)
    fc1_b = 0.01 * jax.random.normal(k2, (4096,), jnp.float32)
    fc2_w = jax.random.normal(k3, (d_out, 4096), jnp.float32) * math.sqrt(1.0 / 4096)
    fc2_b = 0.01 * jax.random.normal(k4, (d_out,), jnp.float32)

    # Permute fc1's input dim from torch NCHW flatten (C,S,S) to NHWC flatten (S,S,C).
    fc1_wp = fc1_w.reshape(4096, 1024, S, S).transpose(0, 2, 3, 1).reshape(4096, d_in)
    fc1 = {'w': fc1_wp.T.astype(jnp.bfloat16),                       # (d_in, 4096)
           'bias': fc1_b.reshape(1, 4096).astype(jnp.float32),
           'nout': 4096}
    n2p = _round_up(d_out, 128)
    fc2 = {'w': jnp.pad(fc2_w.T, ((0, 0), (0, n2p - d_out))).astype(jnp.bfloat16),
           'bias': jnp.pad(fc2_b, (0, n2p - d_out)).reshape(1, n2p).astype(jnp.float32),
           'nout': d_out}
    return {'darknet': layers, 'fc1': fc1, 'fc2': fc2}


# ----------------------------------------------------------------------------
# Forward pass (Pallas kernels).  Input is NCHW like the PyTorch module.
# ----------------------------------------------------------------------------
def yolov1_forward(x_nchw, params):
    x = jnp.transpose(x_nchw, (0, 2, 3, 1))         # single NCHW->NHWC transpose
    for layer in params['darknet']:
        kind = layer['kind']
        if kind == 'pool':
            x = maxpool2x2(x)
        elif kind == 'conv1x1':
            x = conv1x1(x, layer)
        elif kind == 'conv_s1':
            x = conv_kxk_s1(x, layer)
        else:
            x = conv_im2col(x, layer)

    n = x.shape[0]
    flat = x.reshape(n, -1)                 # NHWC flatten (fc1 weights permuted to match)
    fc1 = params['fc1']
    h = fused_matmul(flat, fc1['w'], fc1['bias'],
                     leaky=True, out_dtype=jnp.bfloat16, n_valid=fc1['nout'])
    # Dropout(0.5) is identity in eval mode.
    fc2 = params['fc2']
    out = fused_matmul(h, fc2['w'], fc2['bias'],
                       leaky=False, out_dtype=jnp.float32, n_valid=fc2['nout'])
    return out


# ----------------------------------------------------------------------------
# Pure-JAX reference (lax.conv + jnp), same bf16 operand / f32 accumulation
# numerics and the same pre-packed (scale-folded) weights, used only for a
# correctness cross-check in __main__.
# ----------------------------------------------------------------------------
def reference_forward(x_nchw, params):
    x = jnp.transpose(x_nchw, (0, 2, 3, 1))
    for layer in params['darknet']:
        kind = layer['kind']
        if kind == 'pool':
            n, h, w, c = x.shape
            x = x.reshape(n, h // 2, 2, w // 2, 2, c).max(axis=(2, 4))
            continue
        k, s, p, cout, cin = (layer['k'], layer['stride'], layer['pad'],
                              layer['cout'], layer['cin'])
        w = layer['w']
        if kind == 'conv1x1':
            hwio = w[:, :cout].reshape(1, 1, cin, cout)
        elif kind == 'conv_s1':
            hwio = w[..., :cout].reshape(k, k, cin, cout)
        else:
            hwio = w[:k * k * cin, :cout].reshape(k, k, cin, cout)
        y = jax.lax.conv_general_dilated(
            x.astype(jnp.bfloat16), hwio, window_strides=(s, s),
            padding=[(p, p), (p, p)],
            dimension_numbers=('NHWC', 'HWIO', 'NHWC'),
            preferred_element_type=jnp.float32)
        y = y + layer['bias'][0, :cout]
        x = jnp.where(y >= 0, y, 0.1 * y).astype(jnp.bfloat16)

    n = x.shape[0]
    flat = x.reshape(n, -1).astype(jnp.bfloat16)
    fc1, fc2 = params['fc1'], params['fc2']
    h = jnp.dot(flat, fc1['w'], preferred_element_type=jnp.float32) + fc1['bias'][0]
    h = jnp.where(h >= 0, h, 0.1 * h).astype(jnp.bfloat16)
    d_out = fc2['nout']
    o = (jnp.dot(h, fc2['w'][:, :d_out], preferred_element_type=jnp.float32)
         + fc2['bias'][0, :d_out])
    return o


if __name__ == "__main__":
    key = jax.random.PRNGKey(0)
    key, pkey, xkey = jax.random.split(key, 3)

    # Small shapes: 64x64 input -> darknet output (N, 1, 1, 1024) -> grid S=1.
    N, IN_CH, H, W = 2, 3, 64, 64
    S, B, C = 1, 2, 3

    params = build_params(pkey, in_channels=IN_CH,
                          grid=S, num_boxes=B, num_classes=C)
    x = jax.random.normal(xkey, (N, IN_CH, H, W), jnp.float32)

    out = yolov1_forward(x, params)
    out = jax.block_until_ready(out)

    expected = (N, S * S * (C + B * 5))
    assert out.shape == expected, (out.shape, expected)
    assert bool(jnp.all(jnp.isfinite(out)))

    ref = jax.block_until_ready(reference_forward(x, params))
    err = float(jnp.max(jnp.abs(out - ref)))
    tol = 2e-2 + 2e-2 * float(jnp.max(jnp.abs(ref)))
    assert err <= tol, (err, tol)

    print("KERNEL_OK")
</pallas_src>

<mosaic_0001>
module attributes {stable_mosaic.version = 11 : i64} {
  func.func @_fused_mm_kernel(%arg0: i32, %arg1: i32, %arg2: i32, %arg3: memref<512x256xbf16, #tpu.memory_space<vmem>>, %arg4: memref<256x128xbf16, #tpu.memory_space<vmem>>, %arg5: memref<1x128xf32, #tpu.memory_space<vmem>>, %arg6: memref<512x128xbf16, #tpu.memory_space<vmem>>, %arg7: memref<512x128xf32, #tpu.memory_space<vmem>>) attributes {dimension_semantics = [#tpu.dimension_semantics<parallel>, #tpu.dimension_semantics<parallel>, #tpu.dimension_semantics<arbitrary>], iteration_bounds = array<i64: 4, 1, 1>, scalar_prefetch = 0 : i64, scratch_operands = 1 : i64, tpu.core_type = #tpu.core_type<tc>, window_params = [{transform_indices = @transform_0, window_bounds = array<i64: 512, 256>}, {transform_indices = @transform_1, window_bounds = array<i64: 256, 128>}, {transform_indices = @transform_2, window_bounds = array<i64: 1, 128>}, {transform_indices = @transform_3, window_bounds = array<i64: 512, 128>}]} {
    %c0_i32 = arith.constant 0 : i32
    %0 = arith.cmpi eq, %arg2, %c0_i32 : i32
    %1 = arith.extui %0 : i1 to i32
    %c0_i32_0 = arith.constant 0 : i32
    %2 = arith.cmpi ne, %1, %c0_i32_0 : i32
    scf.if %2 {
      %cst_10 = arith.constant 0.000000e+00 : f32
      %12 = vector.broadcast %cst_10 : f32 to vector<512x128xf32>
      %c0_11 = arith.constant 0 : index
      %c0_12 = arith.constant 0 : index
      %13 = vector.load %arg7[%c0_11, %c0_12] : memref<512x128xf32, #tpu.memory_space<vmem>>, vector<512x128xf32>
      tpu.vector_store %arg7[%c0_11, %c0_12], %12 {strides = array<i32>} : memref<512x128xf32, #tpu.memory_space<vmem>>, vector<512x128xf32>,
    } else {
    }
    %c0 = arith.constant 0 : index
    %c0_1 = arith.constant 0 : index
    %3 = vector.load %arg7[%c0, %c0_1] : memref<512x128xf32, #tpu.memory_space<vmem>>, vector<512x128xf32>
    %c0_2 = arith.constant 0 : index
    %c0_3 = arith.constant 0 : index
    %4 = vector.load %arg3[%c0_2, %c0_3] : memref<512x256xbf16, #tpu.memory_space<vmem>>, vector<512x256xbf16>
    %c0_4 = arith.constant 0 : index
    %c0_5 = arith.constant 0 : index
    %5 = vector.load %arg4[%c0_4, %c0_5] : memref<256x128xbf16, #tpu.memory_space<vmem>>, vector<256x128xbf16>
    %cst = arith.constant dense<0.000000e+00> : vector<512x128xf32>
    %6 = tpu.matmul %4, %5, %cst {dimension_numbers = #tpu.dot_dimension_numbers<[1], [0], [0], [1], [0, 0, 1, 1], [], []>} : vector<512x256xbf16>, vector<256x128xbf16>, vector<512x128xf32> -> vector<512x128xf32>
    %7 = arith.addf %3, %6 : vector<512x128xf32>
    %c0_6 = arith.constant 0 : index
    %c0_7 = arith.constant 0 : index
    %8 = vector.load %arg7[%c0_6, %c0_7] : memref<512x128xf32, #tpu.memory_space<vmem>>, vector<512x128xf32>
    tpu.vector_store %arg7[%c0_6, %c0_7], %7 {strides = array<i32>} : memref<512x128xf32, #tpu.memory_space<vmem>>, vector<512x128xf32>,
    %c0_i32_8 = arith.constant 0 : i32
    %9 = arith.cmpi eq, %arg2, %c0_i32_8 : i32
    %10 = arith.extui %9 : i1 to i32
    %c0_i32_9 = arith.constant 0 : i32
    %11 = arith.cmpi ne, %10, %c0_i32_9 : i32
    scf.if %11 {
      %c0_10 = arith.constant 0 : index
      %c0_11 = arith.constant 0 : index
      %12 = vector.load %arg7[%c0_10, %c0_11] : memref<512x128xf32, #tpu.memory_space<vmem>>, vector<512x128xf32>
      %c0_12 = arith.constant 0 : index
      %c0_13 = arith.constant 0 : index
      %13 = vector.load %arg5[%c0_12, %c0_13] : memref<1x128xf32, #tpu.memory_space<vmem>>, vector<1x128xf32>
      %14 = vector.broadcast %13 : vector<1x128xf32> to vector<512x128xf32>
      %15 = arith.addf %12, %14 : vector<512x128xf32>
      %cst_14 = arith.constant 0.000000e+00 : f32
      %16 = vector.broadcast %cst_14 : f32 to vector<512x128xf32>
      %17 = arith.cmpf oge, %15, %16 : vector<512x128xf32>
      %cst_15 = arith.constant 1.000000e-01 : f32
      %18 = vector.broadcast %cst_15 : f32 to vector<512x128xf32>
      %19 = arith.mulf %18, %15 : vector<512x128xf32>
      %20 = arith.select %17, %15, %19 : vector<512x128xi1>, vector<512x128xf32>
      %21 = arith.truncf %20 : vector<512x128xf32> to vector<512x128xbf16>
      %c0_16 = arith.constant 0 : index
      %c0_17 = arith.constant 0 : index
      %22 = vector.load %arg6[%c0_16, %c0_17] : memref<512x128xbf16, #tpu.memory_space<vmem>>, vector<512x128xbf16>
      tpu.vector_store %arg6[%c0_16, %c0_17], %21 {strides = array<i32>} : memref<512x128xbf16, #tpu.memory_space<vmem>>, vector<512x128xbf16>,
    } else {
    }
    return
  }
  func.func @transform_0(%arg0: i32, %arg1: i32, %arg2: i32) -> (i32, i32) {
    %c0_i32 = arith.constant 0 : i32
    return %arg0, %arg2 : i32, i32
  }
  func.func @transform_1(%arg0: i32, %arg1: i32, %arg2: i32) -> (i32, i32) {
    %c0_i32 = arith.constant 0 : i32
    return %arg2, %arg1 : i32, i32
  }
  func.func @transform_2(%arg0: i32, %arg1: i32, %arg2: i32) -> (i32, i32) {
    %c0_i32 = arith.constant 0 : i32
    %c0_i32_0 = arith.constant 0 : i32
    return %c0_i32, %arg1 : i32, i32
  }
  func.func @transform_3(%arg0: i32, %arg1: i32, %arg2: i32) -> (i32, i32) {
    %c0_i32 = arith.constant 0 : i32
    return %arg0, %arg1 : i32, i32
  }
}

</mosaic_0001>

<bundles_post_ra>
// kernel: tpu_custom_call.1
= control target key start
LH: loop header
LB: loop body
LE: loop exit
PB: predicated region body
PF: predicated region fallthrough
CT: control target
= control target key end

     0   :  { %s3232_s0 = inlined_call_operand.hbm [shape: bf16[2048,256], index: 0, kind: input, shape index: {}]   ;;  %s3233_s1 = inlined_call_operand.hbm [shape: bf16[256,128], index: 1, kind: input, shape index: {}]   ;;  %s3234_s2 = inlined_call_operand.vmem [shape: f32[1,128], index: 2, kind: input, shape index: {}]   ;;  %s3235_s3 = inlined_call_operand.hbm [shape: bf16[2048,128], index: 3, kind: output, shape index: {}]  }
   0x1   :  { %3236 = sst [smem:[#allocation12_spill]] %s3233_s1 }
   0x2   :  { %8 = vsyncpa [#allocation4], 0 }
   0x3   :  { %10 = vsyncpa [#allocation4 + $0x1], 0 }
   0x4   :  { %11 = vsyncpa [#allocation7], 0 }
   0x5   :  { %12 = vsyncpa [#allocation5], 0 }
   0x6   :  { %14 = vsyncpa [#allocation5 + $0x1], 0  ;;  %s2845_s12 = smov 0   ;;  %s2847_s13 = smov 0  }
   0x7   :  { %s2849_s14 = smov 0   ;;  %s2851_s15 = smov 0  }
   0x8   :  { %s2853_s16 = smov 0   ;;  %s2855_s17 = smov 0  }
   0x9 LB: > { %s1960_s18 = sadd.s32 4294967295, %s2816_s17   ;;  %s1961_s19 = sadd.s32 4294967294, %s2816_s17   ;;  %s2816_s17 = sphi %s2855_s17, %s20_s17   ;;  %s2812_s16 = sphi %s2853_s16, %s3249_s16   ;;  %s2808_s15 = sphi %s2851_s15, %s3248_s15   ;;  %s2804_s14 = sphi %s2849_s14, %s3247_s14   ;;  %s2800_s13 = sphi %s2847_s13, %s3246_s13   ;;  %s2796_s12 = sphi %s2845_s12, %s3245_s12  }
   0xa   : > { %p61_p0 = scmp.ne.s32.totalorder %s2800_s13, %s2796_s12  ;;  %p2879_p1 = scmp.eq.s32.totalorder %s1960_s18, 0 }
   0xb   : > { %p2883_p2 = scmp.eq.s32.totalorder %s1960_s18, 3  ;;  %p147_p3 = scmp.eq.s32.totalorder %s1961_s19, 3 }
   0xc   : > { %p2889_p4 = por %p2879_p1, %p61_p0  ;;  %p1962_p5 = scmp.ge.s32.totalorder %s2816_s17, 1 }
   0xd   : > { %p2894_p6 = por %p147_p3, %p61_p0  ;;  %p154_p7 = scmp.lt.s32.totalorder %s2816_s17, 5 }
   0xe   : > { %s3241_s1 = sld [smem:[#allocation12_spill]]  ;;  %s2818_s28 = smov [#allocation6]  }
   0xf   : > { %p2902_p8 = pnand %p1962_p5, %p154_p7  ;;  %s171_s29 = sshll.u32 %s2818_s28, 4  ;;  %s172_s29 = int_to_ptr.vmem [resolvable:$true] %s171_s29 }
  0x10   : > { %s2819_s30 = smov 64   ;;  %s2820_s4 = smov 4  }
  0x11   : > { %p2597_p9 = pneg %p2902_p8  ;;  %s39_s5 = sadd.s32 1, %s2812_s16 }
  0x12   : > { %p41_p11 = scmp.ge.s32.totalorder %s39_s5, 4  ;;  %s48_s6 = sadd.s32 1, %s2804_s14 }
  0x13   : > { %p2598_p10 = pnand %p2597_p9, %p2879_p1  ;;  %p55_p12 = scmp.ne.s32.totalorder %s2804_s14, %s2800_s13 }
  0x14   : > { %s169_s26 = sshll.u32 %s3241_s1, 4  ;;  %p56_p13 = scmp.eq.s32.totalorder %s2816_s17, 0  ;;  %s170_s26 = int_to_ptr.hbm [resolvable:$true] %s169_s26 }
  0x15   : > { %2600 = dma.hbm_to_vmem [thread:$0]  (!%p2598_p10), %s170_s26, 2048, %s172_s29, [#allocation7], %s2819_s30, %s2819_s30, %s2820_s4  }
  0x16   : > { %s3251_s5 = smov (%p41_p11, %s39_s5), 0  ;;  %p2917_p0 = por %p56_p13, %p55_p12 }
  0x17   : > { %p2923_p3 = por %p2883_p2, %p55_p12  ;;  %s43_s9 = ssub.s32 %s2812_s16, %s3251_s5 }
  0x18   : > { %p2610_p5 = scmp.lt.s32.totalorder %s2816_s17, 4  ;;  %p46_p7 = scmp.eq.s32.totalorder %s43_s9, 0 }
  0x19   : > { %s191_s10 = sand.u32 1, %s2804_s14   ;;  %s2300_s19 = sshll.u32 %s2812_s16, 9 }
  0x1a   : > { %s1966_s11 = sshll.u32 %s191_s10, 9  ;;  %s203_s26 = scalar_lea.hbm %s3232_s0, %s2300_s19 }
  0x1b   : > { %s2932_s18 = scalar_select %p46_p7, %s2804_s14, %s48_s6  }
  0x1c   : > { %s195_s28 = scalar_lea.vmem [#allocation3], %s1966_s11  ;;  %s204_s21 = sshll.u32 %s203_s26, 4  ;;  %s205_s21 = int_to_ptr.hbm [resolvable:$true] %s204_s21 }
  0x1d   : > { %s206_s29 = sshll.u32 %s195_s28, 4  ;;  %p2602_p2 = pnand %p2610_p5, %p2917_p0  ;;  %s207_s29 = int_to_ptr.vmem [resolvable:$true] %s206_s29 }
  0x1e   : > { %s192_s30 = scalar_lea.sflag [#allocation4], %s191_s10  ;;  %s2821_s4 = smov 128  }
  0x1f   : > { %s2822_s1 = smov 8   ;;  %218 = sbr.rel (%p2902_p8) target bundleno = 465 (0x1d1), region = 32 }
  0x20   : > { %2604 = dma.hbm_to_vmem [thread:$0]  (!%p2602_p2), %s205_s21, 8192, %s207_s29, %s192_s30, %s2821_s4, %s2821_s4, %s2822_s1  }
  0x21   : > { %s2943_s6 = sand.u32 (!%p2902_p8), 1, %s2800_s13  }
  0x22   : > { %s1971_s9 = sshll.u32 (!%p2902_p8), %s2943_s6, 9  ;;  %s221_s11 = scalar_lea.sflag (!%p2902_p8), [#allocation4], %s2943_s6 }
  0x23   : > { %s2947_s19 = scalar_lea.vmem (!%p2902_p8), [#allocation3], %s1971_s9 }
  0x24   : > { %2783 = dma.done.wait (%p2889_p4), %s221_s11, 8192  }
  0x25   : > { %2785 = vsyncadd (%p2889_p4), %s221_s11, 4294959104 }
  0x26   : > { %2787 = dma.done.wait (%p2879_p1), [#allocation7], 2048  }
  0x27   : > { %2789 = vsyncadd (%p2879_p1), [#allocation7], 4294965248  ;;  %v2372_v0 = vld [vmem:[#allocation6 + $0x38] sm:$0xff]  ;;  %v2371_v2 = vld [vmem:[#allocation6 + $0x30] sm:$0xff]  ;;  %s1973_s22 = sshll.u32 %s2943_s6, 8  ;;  %s2381_s24 = sshll.u32 %s2808_s15, 8 }
  0x28   : > { %v2380_v1 = vld [vmem:[#allocation6 + $0x78] sm:$0xff]  ;;  %907 = vmatpush.bf16.msra.mxu0 %v2372_v0  ;;  %2573 = vmatpush.bf16.msra.mxu2 %v2372_v0  ;;  %v2379_v3 = vld [vmem:[#allocation6 + $0x70] sm:$0xff]  ;;  %v2370_v4 = vld [vmem:[#allocation6 + $0x28] sm:$0xff]  ;;  %s3047_s27 = scalar_lea.vmem [#allocation8], %s1973_s22  ;;  %s1841_s28 = scalar_lea.hbm %s3235_s3, %s2381_s24 }
  0x29   : > { %1076 = vmatpush.bf16.msra.mxu1 %v2380_v1  ;;  %2581 = vmatpush.bf16.msra.mxu3 %v2380_v1  ;;  %v2378_v5 = vld [vmem:[#allocation6 + $0x68] sm:$0xff]  ;;  %v2369_v6 = vld [vmem:[#allocation6 + $0x20] sm:$0xff]  ;;  %v2368_v8 = vld [vmem:[#allocation6 + $0x18] sm:$0xff]  ;;  %s1842_s15 = sshll.u32 %s3047_s27, 4  ;;  %s1844_s29 = sshll.u32 %s1841_s28, 4  ;;  %s1843_s15 = int_to_ptr.vmem [resolvable:$true] %s1842_s15  ;;  %s1845_s29 = int_to_ptr.hbm [resolvable:$true] %s1844_s29 }
  0x2a   : > { %v2377_v7 = vld [vmem:[#allocation6 + $0x60] sm:$0xff]  ;;  %v2376_v9 = vld [vmem:[#allocation6 + $0x58] sm:$0xff]  ;;  %v2367_v10 = vld [vmem:[#allocation6 + $0x10] sm:$0xff]  ;;  %s1829_s21 = scalar_lea.sflag [#allocation5], %s2943_s6  ;;  %s2744_s30 = sshra.s32 %s1845_s29, 4  ;;  %s2745_s30 = int_to_ptr.hbm [resolvable:$true] %s2744_s30 }
  0x2b   : > { %v2375_v11 = vld [vmem:[#allocation6 + $0x50] sm:$0xff]  ;;  %v2366_v12 = vld [vmem:[#allocation6 + $0x8] sm:$0xff]  ;;  %v2365_v14 = vld [vmem:[#allocation6] sm:$0xff]  ;;  %s2746_s4 = scalar_lea.hbm %s2745_s30, 256  ;;  %p2751_p9 = scmp.lt.s32.totalorder %s2745_s30, %s3235_s3 }
  0x2c   : > { %908 = vmatpush.bf16.msra.mxu0 %v2371_v2  ;;  %2574 = vmatpush.bf16.msra.mxu2 %v2371_v2  ;;  %v2374_v13 = vld [vmem:[#allocation6 + $0x48] sm:$0xff]  ;;  %v2373_v15 = vld [vmem:[#allocation6 + $0x40] sm:$0xff]  ;;  %v1984_v28 = vld [vmem:[%s2947_s19 + $0x10] sm:$0xf]  ;;  %p2747_p1 = scmp.ne.s32.totalorder %s2745_s30, %s2746_s4 }
  0x2d   : > { %1077 = vmatpush.bf16.msra.mxu1 %v2379_v3  ;;  %2582 = vmatpush.bf16.msra.mxu3 %v2379_v3  ;;  %v1976_v16 = vld [vmem:[%s2947_s19] sm:$0xf]  ;;  %v2302_v17 = vld [vmem:[%s2947_s19 + $0x4] sm:$0xf0]  ;;  %v2301_v20 = vld [vmem:[%s2947_s19 + $0x4] sm:$0xf] }
  0x2e   : > { %v2104_v18 = vld [vmem:[%s2947_s19 + $0x100] sm:$0xf]  ;;  %v2334_v19 = vld [vmem:[%s2947_s19 + $0x104] sm:$0xf0]  ;;  %v1978_v21 = vld [vmem:[%s2947_s19 + $0x8] sm:$0xf0]  ;;  %v1977_v24 = vor.u32 %v2302_v17, %v1976_v16  ;;  %p2748_p4 = pnand %p2747_p1, %p2923_p3 }
  0x2f   : > { %v2333_v22 = vld [vmem:[%s2947_s19 + $0x104] sm:$0xf]  ;;  %v2106_v23 = vld [vmem:[%s2947_s19 + $0x108] sm:$0xf0]  ;;  %v2105_v25 = vor.u32 %v2334_v19, %v2104_v18  ;;  %v1981_v26 = vor.u32 %v2301_v20, %v1978_v21  ;;  %v2304_v29 = vld [vmem:[%s2947_s19 + $0x14] sm:$0xf0] }
  0x30   : > { %909 = vmatpush.bf16.msra.mxu0 %v2370_v4  ;;  %2575 = vmatpush.bf16.msra.mxu2 %v2370_v4  ;;  %v2109_v27 = vor.u32 %v2333_v22, %v2106_v23  ;;  %v2112_v30 = vld [vmem:[%s2947_s19 + $0x110] sm:$0xf]  ;;  %v2336_v31 = vld [vmem:[%s2947_s19 + $0x114] sm:$0xf0]  ;;  %v2303_v32 = vld [vmem:[%s2947_s19 + $0x14] sm:$0xf]  ;;  %v1985_v36 = vor.u32 %v2304_v29, %v1984_v28  ;;  %p2749_p8 = pneg %p2748_p4 }
  0x31   : > { %1078 = vmatpush.bf16.msra.mxu1 %v2378_v5  ;;  %2583 = vmatpush.bf16.msra.mxu3 %v2378_v5  ;;  %v1986_v33 = vld [vmem:[%s2947_s19 + $0x18] sm:$0xf0]  ;;  %v2335_v34 = vld [vmem:[%s2947_s19 + $0x114] sm:$0xf]  ;;  %v2113_v37 = vor.u32 %v2336_v31, %v2112_v30  ;;  %v1992_v40 = vld [vmem:[%s2947_s19 + $0x20] sm:$0xf] }
  0x32   : > { %v2114_v35 = vld [vmem:[%s2947_s19 + $0x118] sm:$0xf0]  ;;  %v1989_v38 = vor.u32 %v2303_v32, %v1986_v33  ;;  %v2306_v41 = vld [vmem:[%s2947_s19 + $0x24] sm:$0xf0]  ;;  %v2120_v42 = vld [vmem:[%s2947_s19 + $0x120] sm:$0xf] }
  0x33   : > { %v2117_v39 = vor.u32 %v2335_v34, %v2114_v35  ;;  %v2338_v43 = vld [vmem:[%s2947_s19 + $0x124] sm:$0xf0]  ;;  %v2305_v44 = vld [vmem:[%s2947_s19 + $0x24] sm:$0xf]  ;;  %v1994_v45 = vld [vmem:[%s2947_s19 + $0x28] sm:$0xf0]  ;;  %v1993_v48 = vor.u32 %v2306_v41, %v1992_v40 }
  0x34   : > { %910 = vmatpush.bf16.msra.mxu0 %v2369_v6  ;;  %2576 = vmatpush.bf16.msra.mxu2 %v2369_v6  ;;  %v2337_v46 = vld [vmem:[%s2947_s19 + $0x124] sm:$0xf]  ;;  %v2122_v47 = vld [vmem:[%s2947_s19 + $0x128] sm:$0xf0]  ;;  %v2121_v49 = vor.u32 %v2338_v43, %v2120_v42  ;;  %v1997_v50 = vor.u32 %v2305_v44, %v1994_v45  ;;  %v2000_v52 = vld [vmem:[%s2947_s19 + $0x30] sm:$0xf] }
  0x35   : > { %1079 = vmatpush.bf16.msra.mxu1 %v2377_v7  ;;  %2584 = vmatpush.bf16.msra.mxu3 %v2377_v7  ;;  %v2125_v51 = vor.u32 %v2337_v46, %v2122_v47  ;;  %v2308_v53 = vld [vmem:[%s2947_s19 + $0x34] sm:$0xf0]  ;;  %v2128_v54 = vld [vmem:[%s2947_s19 + $0x130] sm:$0xf]  ;;  %v2307_v56 = vld [vmem:[%s2947_s19 + $0x34] sm:$0xf] }
  0x36   : > { %v2340_v55 = vld [vmem:[%s2947_s19 + $0x134] sm:$0xf0]  ;;  %v2002_v57 = vld [vmem:[%s2947_s19 + $0x38] sm:$0xf0]  ;;  %v2339_v58 = vld [vmem:[%s2947_s19 + $0x134] sm:$0xf]  ;;  %v2001_v60 = vor.u32 %v2308_v53, %v2000_v52 }
  0x37   : > { %v2130_v59 = vld [vmem:[%s2947_s19 + $0x138] sm:$0xf0]  ;;  %v2129_v61 = vor.u32 %v2340_v55, %v2128_v54  ;;  %v2005_v62 = vor.u32 %v2307_v56, %v2002_v57  ;;  %v2008_v0 = vld [vmem:[%s2947_s19 + $0x40] sm:$0xf]  ;;  %v2310_v1 = vld [vmem:[%s2947_s19 + $0x44] sm:$0xf0] }
  0x38   : > { %911 = vmatpush.bf16.msra.mxu0 %v2368_v8  ;;  %2577 = vmatpush.bf16.msra.mxu2 %v2368_v8  ;;  %v2133_v63 = vor.u32 %v2339_v58, %v2130_v59  ;;  %v2136_v2 = vld [vmem:[%s2947_s19 + $0x140] sm:$0xf]  ;;  %v2342_v3 = vld [vmem:[%s2947_s19 + $0x144] sm:$0xf0]  ;;  %v2309_v4 = vld [vmem:[%s2947_s19 + $0x44] sm:$0xf]  ;;  %v2009_v8 = vor.u32 %v2310_v1, %v2008_v0 }
  0x39   : > { %1080 = vmatpush.bf16.msra.mxu1 %v2376_v9  ;;  %2585 = vmatpush.bf16.msra.mxu3 %v2376_v9  ;;  %v2010_v5 = vld [vmem:[%s2947_s19 + $0x48] sm:$0xf0]  ;;  %v2341_v6 = vld [vmem:[%s2947_s19 + $0x144] sm:$0xf]  ;;  %v2137_v9 = vor.u32 %v2342_v3, %v2136_v2  ;;  %v2311_v16 = vld [vmem:[%s2947_s19 + $0x54] sm:$0xf] }
  0x3a   : > { %v2138_v7 = vld [vmem:[%s2947_s19 + $0x148] sm:$0xf0]  ;;  %v2018_v17 = vld [vmem:[%s2947_s19 + $0x58] sm:$0xf0]  ;;  %v2343_v18 = vld [vmem:[%s2947_s19 + $0x154] sm:$0xf] }
  0x3b   : > { %v2146_v19 = vld [vmem:[%s2947_s19 + $0x158] sm:$0xf0]  ;;  %v2021_v22 = vor.u32 %v2311_v16, %v2018_v17  ;;  %v2313_v28 = vld [vmem:[%s2947_s19 + $0x64] sm:$0xf]  ;;  %v2026_v29 = vld [vmem:[%s2947_s19 + $0x68] sm:$0xf0] }
  0x3c   : > { %912 = vmatpush.bf16.msra.mxu0 %v2367_v10  ;;  %2578 = vmatpush.bf16.msra.mxu2 %v2367_v10  ;;  %v2013_v10 = vor.u32 %v2309_v4, %v2010_v5  ;;  %v2149_v23 = vor.u32 %v2343_v18, %v2146_v19  ;;  %v2345_v30 = vld [vmem:[%s2947_s19 + $0x164] sm:$0xf]  ;;  %v2154_v31 = vld [vmem:[%s2947_s19 + $0x168] sm:$0xf0]  ;;  %v2029_v34 = vor.u32 %v2313_v28, %v2026_v29  ;;  %v2315_v40 = vld [vmem:[%s2947_s19 + $0x74] sm:$0xf] }
  0x3d   : > { %1081 = vmatpush.bf16.msra.mxu1 %v2375_v11  ;;  %2586 = vmatpush.bf16.msra.mxu3 %v2375_v11  ;;  %v2141_v11 = vor.u32 %v2341_v6, %v2138_v7  ;;  %v2157_v35 = vor.u32 %v2345_v30, %v2154_v31  ;;  %v2034_v41 = vld [vmem:[%s2947_s19 + $0x78] sm:$0xf0]  ;;  %v2347_v42 = vld [vmem:[%s2947_s19 + $0x174] sm:$0xf]  ;;  %v2317_v52 = vld [vmem:[%s2947_s19 + $0x84] sm:$0xf] }
  0x3e   : > { %v2162_v43 = vld [vmem:[%s2947_s19 + $0x178] sm:$0xf0]  ;;  %v2037_v46 = vor.u32 %v2315_v40, %v2034_v41  ;;  %v2042_v53 = vld [vmem:[%s2947_s19 + $0x88] sm:$0xf0]  ;;  %v2349_v54 = vld [vmem:[%s2947_s19 + $0x184] sm:$0xf] }
  0x3f   : > { %v2165_v47 = vor.u32 %v2347_v42, %v2162_v43  ;;  %v2170_v55 = vld [vmem:[%s2947_s19 + $0x188] sm:$0xf0]  ;;  %v2045_v59 = vor.u32 %v2317_v52, %v2042_v53  ;;  %v2048_v7 = vld [vmem:[%s2947_s19 + $0x90] sm:$0xf]  ;;  %v2178_v16 = vld [vmem:[%s2947_s19 + $0x198] sm:$0xf0] }
  0x40   : > { %913 = vmatpush.bf16.msra.mxu0 %v2366_v12  ;;  %2579 = vmatpush.bf16.msra.mxu2 %v2366_v12  ;;  %v2016_v12 = vld [vmem:[%s2947_s19 + $0x50] sm:$0xf]  ;;  %v2058_v52 = vld [vmem:[%s2947_s19 + $0xa8] sm:$0xf0]  ;;  %v2353_v53 = vld [vmem:[%s2947_s19 + $0x1a4] sm:$0xf] }
  0x41   : > { %1082 = vmatpush.bf16.msra.mxu1 %v2374_v13  ;;  %2587 = vmatpush.bf16.msra.mxu3 %v2374_v13  ;;  %v2312_v13 = vld [vmem:[%s2947_s19 + $0x54] sm:$0xf0] }
  0x42   : > { %v2017_v20 = vor.u32 %v2312_v13, %v2016_v12  ;;  %v2319_v13 = vld [vmem:[%s2947_s19 + $0x94] sm:$0xf] }
  0x44   : > { %914 = vmatpush.bf16.msra.mxu0 %v2365_v14  ;;  %2580 = vmatpush.bf16.msra.mxu2 %v2365_v14  ;;  %v2144_v14 = vld [vmem:[%s2947_s19 + $0x150] sm:$0xf] }
  0x45   : > { %1083 = vmatpush.bf16.msra.mxu1 %v2373_v15  ;;  %2588 = vmatpush.bf16.msra.mxu3 %v2373_v15  ;;  %v2344_v15 = vld [vmem:[%s2947_s19 + $0x154] sm:$0xf0] }
  0x46   : > { %v2145_v21 = vor.u32 %v2344_v15, %v2144_v14  ;;  %v2050_v14 = vld [vmem:[%s2947_s19 + $0x98] sm:$0xf0]  ;;  %v2351_v15 = vld [vmem:[%s2947_s19 + $0x194] sm:$0xf] }
  0x47   : > { %915 = vmatmul.bf16.vlgmr.msra.gmra.mxu0 %v1977_v24  ;;  %995 = vmatmul.bf16.vlgmr.msra.gmra.mxu2 %v2105_v25  ;;  %v2024_v24 = vld [vmem:[%s2947_s19 + $0x60] sm:$0xf]  ;;  %v2314_v25 = vld [vmem:[%s2947_s19 + $0x64] sm:$0xf0]  ;;  %v2181_v28 = vor.u32 %v2351_v15, %v2178_v16 }
  0x48   : > { %1084 = vmatmul.bf16.vlgmr.msra.gmra.mxu1 %v1981_v26  ;;  %1164 = vmatmul.bf16.vlgmr.msra.gmra.mxu3 %v2109_v27  ;;  %v2152_v26 = vld [vmem:[%s2947_s19 + $0x160] sm:$0xf]  ;;  %v2346_v27 = vld [vmem:[%s2947_s19 + $0x164] sm:$0xf0]  ;;  %v2025_v32 = vor.u32 %v2314_v25, %v2024_v24 }
  0x49   : > { %v2153_v33 = vor.u32 %v2346_v27, %v2152_v26 }
  0x57   : > { %920 = vmatmul.bf16.gmra.mxu0 %v1985_v36  ;;  %1000 = vmatmul.bf16.gmra.mxu2 %v2113_v37  ;;  %v2032_v36 = vld [vmem:[%s2947_s19 + $0x70] sm:$0xf]  ;;  %v2316_v37 = vld [vmem:[%s2947_s19 + $0x74] sm:$0xf0] }
  0x58   : > { %1089 = vmatmul.bf16.gmra.mxu1 %v1989_v38  ;;  %1169 = vmatmul.bf16.gmra.mxu3 %v2117_v39  ;;  %v2160_v38 = vld [vmem:[%s2947_s19 + $0x170] sm:$0xf]  ;;  %v2348_v39 = vld [vmem:[%s2947_s19 + $0x174] sm:$0xf0]  ;;  %v2033_v44 = vor.u32 %v2316_v37, %v2032_v36 }
  0x59   : > { %v2161_v45 = vor.u32 %v2348_v39, %v2160_v38 }
  0x67   : > { %925 = vmatmul.bf16.gmra.mxu0 %v1993_v48  ;;  %1005 = vmatmul.bf16.gmra.mxu2 %v2121_v49  ;;  %v2040_v48 = vld [vmem:[%s2947_s19 + $0x80] sm:$0xf]  ;;  %v2318_v49 = vld [vmem:[%s2947_s19 + $0x84] sm:$0xf0] }
  0x68   : > { %1094 = vmatmul.bf16.gmra.mxu1 %v1997_v50  ;;  %1174 = vmatmul.bf16.gmra.mxu3 %v2125_v51  ;;  %v2168_v50 = vld [vmem:[%s2947_s19 + $0x180] sm:$0xf]  ;;  %v2350_v51 = vld [vmem:[%s2947_s19 + $0x184] sm:$0xf0]  ;;  %v2041_v56 = vor.u32 %v2318_v49, %v2040_v48 }
  0x69   : > { %v2169_v57 = vor.u32 %v2350_v51, %v2168_v50  ;;  %v2354_v48 = vld [vmem:[%s2947_s19 + $0x1a4] sm:$0xf0]  ;;  %v2321_v51 = vld [vmem:[%s2947_s19 + $0xa4] sm:$0xf] }
  0x77   : > { %930 = vmatmul.bf16.gmra.mxu0 %v2001_v60  ;;  %1010 = vmatmul.bf16.gmra.mxu2 %v2129_v61  ;;  %v2173_v60 = vor.u32 %v2349_v54, %v2170_v55  ;;  %v2186_v54 = vld [vmem:[%s2947_s19 + $0x1a8] sm:$0xf0] }
  0x78   : > { %1099 = vmatmul.bf16.gmra.mxu1 %v2005_v62  ;;  %1179 = vmatmul.bf16.gmra.mxu3 %v2133_v63  ;;  %v3032_v63 = vld [vmem:[%s3234_s2] ss:$0 sm:$0xff] }
  0x87   : > { %935 = vmatmul.bf16.gmra.mxu0 %v2009_v8  ;;  %1015 = vmatmul.bf16.gmra.mxu2 %v2137_v9  ;;  %v2320_v8 = vld [vmem:[%s2947_s19 + $0x94] sm:$0xf0]  ;;  %v2176_v9 = vld [vmem:[%s2947_s19 + $0x190] sm:$0xf] }
  0x88   : > { %1104 = vmatmul.bf16.gmra.mxu1 %v2013_v10  ;;  %1184 = vmatmul.bf16.gmra.mxu3 %v2141_v11  ;;  %v2352_v10 = vld [vmem:[%s2947_s19 + $0x194] sm:$0xf0] }
  0x97   : > { %940 = vmatmul.bf16.gmra.mxu0 %v2017_v20  ;;  %1020 = vmatmul.bf16.gmra.mxu2 %v2145_v21  ;;  %v2049_v21 = vor.u32 %v2320_v8, %v2048_v7 }
  0x98   : > { %1109 = vmatmul.bf16.gmra.mxu1 %v2021_v22  ;;  %1189 = vmatmul.bf16.gmra.mxu3 %v2149_v23  ;;  %v2177_v22 = vor.u32 %v2352_v10, %v2176_v9  ;;  %v2053_v23 = vor.u32 %v2319_v13, %v2050_v14 }
  0xa7   : > { %945 = vmatmul.bf16.gmra.mxu0 %v2025_v32  ;;  %1025 = vmatmul.bf16.gmra.mxu2 %v2153_v33 }
  0xa8   : > { %1114 = vmatmul.bf16.gmra.mxu1 %v2029_v34  ;;  %1194 = vmatmul.bf16.gmra.mxu3 %v2157_v35 }
  0xb7   : > { %950 = vmatmul.bf16.gmra.mxu0 %v2033_v44  ;;  %1030 = vmatmul.bf16.gmra.mxu2 %v2161_v45  ;;  %v2056_v45 = vld [vmem:[%s2947_s19 + $0xa0] sm:$0xf] }
  0xb8   : > { %1119 = vmatmul.bf16.gmra.mxu1 %v2037_v46  ;;  %1199 = vmatmul.bf16.gmra.mxu3 %v2165_v47  ;;  %v2322_v46 = vld [vmem:[%s2947_s19 + $0xa4] sm:$0xf0]  ;;  %v2184_v47 = vld [vmem:[%s2947_s19 + $0x1a0] sm:$0xf] }
  0xc4   : > { %v916_v58 = vpop.f32.mrf.mxu0 }
  0xc5   : > { %v1085_v61 = vpop.f32.mrf.mxu1 }
  0xc6   : > { %v1086_v62 = vadd.f32 %v1085_v61, %v916_v58  ;;  %v2061_v61 = vor.u32 %v2321_v51, %v2058_v52 }
  0xc7   : > { %955 = vmatmul.bf16.gmra.mxu0 %v2041_v56  ;;  %1035 = vmatmul.bf16.gmra.mxu2 %v2169_v57 }
  0xc8   : > { %1124 = vmatmul.bf16.gmra.mxu1 %v2045_v59  ;;  %1204 = vmatmul.bf16.gmra.mxu3 %v2173_v60  ;;  %v1444_v2 = vadd.f32 %v3032_v63, %v1086_v62  ;;  %v2057_v59 = vor.u32 %v2322_v46, %v2056_v45  ;;  %v2185_v60 = vor.u32 %v2354_v48, %v2184_v47 }
  0xca   : > { %v996_v0 = vpop.f32.mrf.mxu2  ;;  %v1572_v11 = vmul.f32 0.1, %v1444_v2  ;;  %vm1508_vm0 = vcmp.ge.f32.partialorder %v1444_v2, 0.0 }
  0xcb   : > { %v1165_v1 = vpop.f32.mrf.mxu3 }
  0xcc   : > { %v918_v3 = vpop.f32.mrf.mxu0  ;;  %v1166_v5 = vadd.f32 %v1165_v1, %v996_v0  ;;  %v1636_v24 = vsel %vm1508_vm0, %v1444_v2, %v1572_v11 }
  0xcd   : > { %v1087_v4 = vpop.f32.mrf.mxu1 }
  0xce   : > { %v1088_v6 = vadd.f32 %v1087_v4, %v918_v3  ;;  %v1476_v17 = vadd.f32 %v3032_v63, %v1166_v5  ;;  %v2189_v3 = vor.u32 %v2353_v53, %v2186_v54 }
  0xd0   : > { %v1445_v12 = vadd.f32 %v3032_v63, %v1088_v6  ;;  %v1604_v31 = vmul.f32 0.1, %v1476_v17  ;;  %vm1540_vm2 = vcmp.ge.f32.partialorder %v1476_v17, 0.0 }
  0xd2   : > { %vm1509_vm1 = vcmp.ge.f32.partialorder %v1445_v12, 0.0  ;;  %v1573_v18 = vmul.f32 0.1, %v1445_v12  ;;  %v998_v19 = vpop.f32.mrf.mxu2  ;;  %v1668_v35 = vsel %vm1540_vm2, %v1476_v17, %v1604_v31 }
  0xd3   : > { %v1167_v20 = vpop.f32.mrf.mxu3 }
  0xd4   : > { %v1637_v25 = vsel %vm1509_vm1, %v1445_v12, %v1573_v18  ;;  %v1168_v26 = vadd.f32 %v1167_v20, %v998_v19  ;;  %v921_v27 = vpop.f32.mrf.mxu0  ;;  %v2064_v20 = vld [vmem:[%s2947_s19 + $0xb0] sm:$0xf] }
  0xd5   : > { %v2385_v29 = vpack.c.bf16 %v1637_v25, %v1636_v24  ;;  %v1090_v30 = vpop.f32.mrf.mxu1 }
  0xd6   : > { %v1477_v32 = vadd.f32 %v3032_v63, %v1168_v26  ;;  %v1091_v34 = vadd.f32 %v1090_v30, %v921_v27  ;;  %v2323_v26 = vld [vmem:[%s2947_s19 + $0xb4] sm:$0xf]  ;;  %v2066_v27 = vld [vmem:[%s2947_s19 + $0xb8] sm:$0xf0] }
  0xd7   : > { %2386 = vst [vmem:[%s3047_s27] sm:$0xff] %v2385_v29   ;;  %960 = vmatmul.bf16.gmra.mxu0 %v2049_v21  ;;  %1040 = vmatmul.bf16.gmra.mxu2 %v2177_v22  ;;  %v2324_v21 = vld [vmem:[%s2947_s19 + $0xb4] sm:$0xf0]  ;;  %v2192_v22 = vld [vmem:[%s2947_s19 + $0x1b0] sm:$0xf]  ;;  %v2194_v29 = vld [vmem:[%s2947_s19 + $0x1b8] sm:$0xf0] }
  0xd8   : > { %vm1541_vm3 = vcmp.ge.f32.partialorder %v1477_v32, 0.0  ;;  %v1605_v33 = vmul.f32 0.1, %v1477_v32  ;;  %1129 = vmatmul.bf16.gmra.mxu1 %v2053_v23  ;;  %1209 = vmatmul.bf16.gmra.mxu3 %v2181_v28  ;;  %v1446_v40 = vadd.f32 %v3032_v63, %v1091_v34  ;;  %v2356_v23 = vld [vmem:[%s2947_s19 + $0x1b4] sm:$0xf0]  ;;  %v2065_v34 = vor.u32 %v2324_v21, %v2064_v20 }
  0xd9   : > { %v2355_v28 = vld [vmem:[%s2947_s19 + $0x1b4] sm:$0xf] }
  0xda   : > { %v1669_v36 = vsel %vm1541_vm3, %v1477_v32, %v1605_v33  ;;  %v1001_v37 = vpop.f32.mrf.mxu2  ;;  %v1574_v49 = vmul.f32 0.1, %v1446_v40  ;;  %vm1510_vm4 = vcmp.ge.f32.partialorder %v1446_v40, 0.0 }
  0xdb   : > { %v2465_v38 = vpack.c.bf16 %v1669_v36, %v1668_v35  ;;  %v1170_v39 = vpop.f32.mrf.mxu3  ;;  %v2193_v35 = vor.u32 %v2356_v23, %v2192_v22  ;;  %v2069_v36 = vor.u32 %v2323_v26, %v2066_v27 }
  0xdc   : > { %v923_v41 = vpop.f32.mrf.mxu0  ;;  %v1171_v43 = vadd.f32 %v1170_v39, %v1001_v37  ;;  %v1638_v62 = vsel %vm1510_vm4, %v1446_v40, %v1574_v49 }
  0xdd   : > { %2557 = vst [vmem:[%s3047_s27 + $0x80] sm:$0xff] %v2465_v38   ;;  %v1092_v42 = vpop.f32.mrf.mxu1 }
  0xde   : > { %v1093_v44 = vadd.f32 %v1092_v42, %v923_v41  ;;  %v1478_v55 = vadd.f32 %v3032_v63, %v1171_v43  ;;  %v2197_v41 = vor.u32 %v2355_v28, %v2194_v29 }
  0xe0   : > { %v1447_v50 = vadd.f32 %v3032_v63, %v1093_v44  ;;  %v1606_v6 = vmul.f32 0.1, %v1478_v55  ;;  %vm1542_vm6 = vcmp.ge.f32.partialorder %v1478_v55, 0.0 }
  0xe2   : > { %vm1511_vm5 = vcmp.ge.f32.partialorder %v1447_v50, 0.0  ;;  %v1575_v56 = vmul.f32 0.1, %v1447_v50  ;;  %v1003_v57 = vpop.f32.mrf.mxu2  ;;  %v1670_v10 = vsel %vm1542_vm6, %v1478_v55, %v1606_v6 }
  0xe3   : > { %v1172_v58 = vpop.f32.mrf.mxu3 }
  0xe4   : > { %v1639_v0 = vsel %vm1511_vm5, %v1447_v50, %v1575_v56  ;;  %v1173_v1 = vadd.f32 %v1172_v58, %v1003_v57  ;;  %v926_v2 = vpop.f32.mrf.mxu0  ;;  %v2072_v58 = vld [vmem:[%s2947_s19 + $0xc0] sm:$0xf] }
  0xe5   : > { %v2390_v4 = vpack.c.bf16 %v1639_v0, %v1638_v62  ;;  %v1095_v5 = vpop.f32.mrf.mxu1 }
  0xe6   : > { %v1479_v7 = vadd.f32 %v3032_v63, %v1173_v1  ;;  %v1096_v9 = vadd.f32 %v1095_v5, %v926_v2  ;;  %v2325_v1 = vld [vmem:[%s2947_s19 + $0xc4] sm:$0xf]  ;;  %v2074_v2 = vld [vmem:[%s2947_s19 + $0xc8] sm:$0xf0] }
  0xe7   : > { %2542 = vst [vmem:[%s3047_s27 + $0x8] sm:$0xff] %v2390_v4   ;;  %965 = vmatmul.bf16.gmra.mxu0 %v2057_v59  ;;  %1045 = vmatmul.bf16.gmra.mxu2 %v2185_v60  ;;  %v2326_v59 = vld [vmem:[%s2947_s19 + $0xc4] sm:$0xf0]  ;;  %v2200_v60 = vld [vmem:[%s2947_s19 + $0x1c0] sm:$0xf] }
  0xe8   : > { %vm1543_vm7 = vcmp.ge.f32.partialorder %v1479_v7, 0.0  ;;  %v1607_v8 = vmul.f32 0.1, %v1479_v7  ;;  %1134 = vmatmul.bf16.gmra.mxu1 %v2061_v61  ;;  %1214 = vmatmul.bf16.gmra.mxu3 %v2189_v3  ;;  %v1448_v15 = vadd.f32 %v3032_v63, %v1096_v9  ;;  %v2358_v61 = vld [vmem:[%s2947_s19 + $0x1c4] sm:$0xf0]  ;;  %v2073_v9 = vor.u32 %v2326_v59, %v2072_v58 }
  0xe9   : > { %v2357_v3 = vld [vmem:[%s2947_s19 + $0x1c4] sm:$0xf]  ;;  %v2202_v4 = vld [vmem:[%s2947_s19 + $0x1c8] sm:$0xf0] }
  0xea   : > { %v1671_v11 = vsel %vm1543_vm7, %v1479_v7, %v1607_v8  ;;  %v1006_v12 = vpop.f32.mrf.mxu2  ;;  %v1576_v24 = vmul.f32 0.1, %v1448_v15  ;;  %vm1512_vm8 = vcmp.ge.f32.partialorder %v1448_v15, 0.0 }
  0xeb   : > { %v2470_v13 = vpack.c.bf16 %v1671_v11, %v1670_v10  ;;  %v1175_v14 = vpop.f32.mrf.mxu3  ;;  %v2201_v10 = vor.u32 %v2358_v61, %v2200_v60  ;;  %v2077_v11 = vor.u32 %v2325_v1, %v2074_v2 }
  0xec   : > { %v928_v16 = vpop.f32.mrf.mxu0  ;;  %v1176_v18 = vadd.f32 %v1175_v14, %v1006_v12  ;;  %v1640_v37 = vsel %vm1512_vm8, %v1448_v15, %v1576_v24 }
  0xed   : > { %2558 = vst [vmem:[%s3047_s27 + $0x88] sm:$0xff] %v2470_v13   ;;  %v1097_v17 = vpop.f32.mrf.mxu1 }
  0xee   : > { %v1098_v19 = vadd.f32 %v1097_v17, %v928_v16  ;;  %v1480_v30 = vadd.f32 %v3032_v63, %v1176_v18  ;;  %v2205_v16 = vor.u32 %v2357_v3, %v2202_v4 }
  0xf0   : > { %v1449_v25 = vadd.f32 %v3032_v63, %v1098_v19  ;;  %v1608_v44 = vmul.f32 0.1, %v1480_v30  ;;  %vm1544_vm10 = vcmp.ge.f32.partialorder %v1480_v30, 0.0 }
  0xf2   : > { %vm1513_vm9 = vcmp.ge.f32.partialorder %v1449_v25, 0.0  ;;  %v1577_v31 = vmul.f32 0.1, %v1449_v25  ;;  %v1008_v32 = vpop.f32.mrf.mxu2  ;;  %v1672_v48 = vsel %vm1544_vm10, %v1480_v30, %v1608_v44 }
  0xf3   : > { %v1177_v33 = vpop.f32.mrf.mxu3 }
  0xf4   : > { %v1641_v38 = vsel %vm1513_vm9, %v1449_v25, %v1577_v31  ;;  %v1178_v39 = vadd.f32 %v1177_v33, %v1008_v32  ;;  %v931_v40 = vpop.f32.mrf.mxu0  ;;  %v2080_v33 = vld [vmem:[%s2947_s19 + $0xd0] sm:$0xf] }
  0xf5   : > { %v2395_v42 = vpack.c.bf16 %v1641_v38, %v1640_v37  ;;  %v1100_v43 = vpop.f32.mrf.mxu1 }
  0xf6   : > { %v1481_v45 = vadd.f32 %v3032_v63, %v1178_v39  ;;  %v1101_v47 = vadd.f32 %v1100_v43, %v931_v40  ;;  %v2327_v39 = vld [vmem:[%s2947_s19 + $0xd4] sm:$0xf]  ;;  %v2082_v40 = vld [vmem:[%s2947_s19 + $0xd8] sm:$0xf0] }
  0xf7   : > { %2543 = vst [vmem:[%s3047_s27 + $0x10] sm:$0xff] %v2395_v42   ;;  %970 = vmatmul.bf16.gmra.mxu0 %v2065_v34  ;;  %1050 = vmatmul.bf16.gmra.mxu2 %v2193_v35  ;;  %v2328_v34 = vld [vmem:[%s2947_s19 + $0xd4] sm:$0xf0]  ;;  %v2208_v35 = vld [vmem:[%s2947_s19 + $0x1d0] sm:$0xf] }
  0xf8   : > { %vm1545_vm11 = vcmp.ge.f32.partialorder %v1481_v45, 0.0  ;;  %v1609_v46 = vmul.f32 0.1, %v1481_v45  ;;  %1139 = vmatmul.bf16.gmra.mxu1 %v2069_v36  ;;  %1219 = vmatmul.bf16.gmra.mxu3 %v2197_v41  ;;  %v1450_v53 = vadd.f32 %v3032_v63, %v1101_v47  ;;  %v2360_v36 = vld [vmem:[%s2947_s19 + $0x1d4] sm:$0xf0]  ;;  %v2081_v47 = vor.u32 %v2328_v34, %v2080_v33 }
  0xf9   : > { %v2359_v41 = vld [vmem:[%s2947_s19 + $0x1d4] sm:$0xf]  ;;  %v2210_v42 = vld [vmem:[%s2947_s19 + $0x1d8] sm:$0xf0] }
  0xfa   : > { %v1673_v49 = vsel %vm1545_vm11, %v1481_v45, %v1609_v46  ;;  %v1011_v50 = vpop.f32.mrf.mxu2  ;;  %v1578_v62 = vmul.f32 0.1, %v1450_v53  ;;  %vm1514_vm12 = vcmp.ge.f32.partialorder %v1450_v53, 0.0 }
  0xfb   : > { %v2475_v51 = vpack.c.bf16 %v1673_v49, %v1672_v48  ;;  %v1180_v52 = vpop.f32.mrf.mxu3  ;;  %v2209_v48 = vor.u32 %v2360_v36, %v2208_v35  ;;  %v2085_v49 = vor.u32 %v2327_v39, %v2082_v40 }
  0xfc   : > { %v933_v54 = vpop.f32.mrf.mxu0  ;;  %v1181_v56 = vadd.f32 %v1180_v52, %v1011_v50  ;;  %v1642_v12 = vsel %vm1514_vm12, %v1450_v53, %v1578_v62 }
  0xfd   : > { %2559 = vst [vmem:[%s3047_s27 + $0x90] sm:$0xff] %v2475_v51   ;;  %v1102_v55 = vpop.f32.mrf.mxu1 }
  0xfe   : > { %v1103_v57 = vadd.f32 %v1102_v55, %v933_v54  ;;  %v1482_v5 = vadd.f32 %v3032_v63, %v1181_v56  ;;  %v2213_v54 = vor.u32 %v2359_v41, %v2210_v42 }
 0x100   : > { %v1451_v0 = vadd.f32 %v3032_v63, %v1103_v57  ;;  %v1610_v19 = vmul.f32 0.1, %v1482_v5  ;;  %vm1546_vm14 = vcmp.ge.f32.partialorder %v1482_v5, 0.0 }
 0x102   : > { %vm1515_vm13 = vcmp.ge.f32.partialorder %v1451_v0, 0.0  ;;  %v1579_v6 = vmul.f32 0.1, %v1451_v0  ;;  %v1013_v7 = vpop.f32.mrf.mxu2  ;;  %v1674_v23 = vsel %vm1546_vm14, %v1482_v5, %v1610_v19 }
 0x103   : > { %v1182_v8 = vpop.f32.mrf.mxu3 }
 0x104   : > { %v1643_v13 = vsel %vm1515_vm13, %v1451_v0, %v1579_v6  ;;  %v1183_v14 = vadd.f32 %v1182_v8, %v1013_v7  ;;  %v936_v15 = vpop.f32.mrf.mxu0  ;;  %v2088_v8 = vld [vmem:[%s2947_s19 + $0xe0] sm:$0xf] }
 0x105   : > { %v2400_v17 = vpack.c.bf16 %v1643_v13, %v1642_v12  ;;  %v1105_v18 = vpop.f32.mrf.mxu1 }
 0x106   : > { %v1483_v20 = vadd.f32 %v3032_v63, %v1183_v14  ;;  %v1106_v22 = vadd.f32 %v1105_v18, %v936_v15  ;;  %v2329_v14 = vld [vmem:[%s2947_s19 + $0xe4] sm:$0xf]  ;;  %v2090_v15 = vld [vmem:[%s2947_s19 + $0xe8] sm:$0xf0] }
 0x107   : > { %2544 = vst [vmem:[%s3047_s27 + $0x18] sm:$0xff] %v2400_v17   ;;  %975 = vmatmul.bf16.gmra.mxu0 %v2073_v9  ;;  %1055 = vmatmul.bf16.gmra.mxu2 %v2201_v10  ;;  %v2330_v9 = vld [vmem:[%s2947_s19 + $0xe4] sm:$0xf0]  ;;  %v2216_v10 = vld [vmem:[%s2947_s19 + $0x1e0] sm:$0xf] }
 0x108   : > { %vm1547_vm15 = vcmp.ge.f32.partialorder %v1483_v20, 0.0  ;;  %v1611_v21 = vmul.f32 0.1, %v1483_v20  ;;  %1144 = vmatmul.bf16.gmra.mxu1 %v2077_v11  ;;  %1224 = vmatmul.bf16.gmra.mxu3 %v2205_v16  ;;  %v1452_v28 = vadd.f32 %v3032_v63, %v1106_v22  ;;  %v2362_v11 = vld [vmem:[%s2947_s19 + $0x1e4] sm:$0xf0]  ;;  %v2089_v22 = vor.u32 %v2330_v9, %v2088_v8 }
 0x109   : > { %v2361_v16 = vld [vmem:[%s2947_s19 + $0x1e4] sm:$0xf]  ;;  %v2218_v17 = vld [vmem:[%s2947_s19 + $0x1e8] sm:$0xf0] }
 0x10a   : > { %v1675_v24 = vsel %vm1547_vm15, %v1483_v20, %v1611_v21  ;;  %v1016_v25 = vpop.f32.mrf.mxu2  ;;  %v1580_v37 = vmul.f32 0.1, %v1452_v28  ;;  %vm1516_vm0 = vcmp.ge.f32.partialorder %v1452_v28, 0.0 }
 0x10b   : > { %v2480_v26 = vpack.c.bf16 %v1675_v24, %v1674_v23  ;;  %v1185_v27 = vpop.f32.mrf.mxu3  ;;  %v2217_v23 = vor.u32 %v2362_v11, %v2216_v10  ;;  %v2093_v24 = vor.u32 %v2329_v14, %v2090_v15 }
 0x10c   : > { %v938_v29 = vpop.f32.mrf.mxu0  ;;  %v1186_v31 = vadd.f32 %v1185_v27, %v1016_v25  ;;  %v1644_v50 = vsel %vm1516_vm0, %v1452_v28, %v1580_v37 }
 0x10d   : > { %2560 = vst [vmem:[%s3047_s27 + $0x98] sm:$0xff] %v2480_v26   ;;  %v1107_v30 = vpop.f32.mrf.mxu1 }
 0x10e   : > { %v1108_v32 = vadd.f32 %v1107_v30, %v938_v29  ;;  %v1484_v43 = vadd.f32 %v3032_v63, %v1186_v31  ;;  %v2221_v29 = vor.u32 %v2361_v16, %v2218_v17 }
 0x110   : > { %v1453_v38 = vadd.f32 %v3032_v63, %v1108_v32  ;;  %v1612_v57 = vmul.f32 0.1, %v1484_v43  ;;  %vm1548_vm2 = vcmp.ge.f32.partialorder %v1484_v43, 0.0 }
 0x112   : > { %vm1517_vm1 = vcmp.ge.f32.partialorder %v1453_v38, 0.0  ;;  %v1581_v44 = vmul.f32 0.1, %v1453_v38  ;;  %v1018_v45 = vpop.f32.mrf.mxu2  ;;  %v1676_v61 = vsel %vm1548_vm2, %v1484_v43, %v1612_v57 }
 0x113   : > { %v1187_v46 = vpop.f32.mrf.mxu3 }
 0x114   : > { %v1645_v51 = vsel %vm1517_vm1, %v1453_v38, %v1581_v44  ;;  %v1188_v52 = vadd.f32 %v1187_v46, %v1018_v45  ;;  %v941_v53 = vpop.f32.mrf.mxu0  ;;  %v2096_v46 = vld [vmem:[%s2947_s19 + $0xf0] sm:$0xf] }
 0x115   : > { %v2405_v55 = vpack.c.bf16 %v1645_v51, %v1644_v50  ;;  %v1110_v56 = vpop.f32.mrf.mxu1 }
 0x116   : > { %v1485_v58 = vadd.f32 %v3032_v63, %v1188_v52  ;;  %v1111_v60 = vadd.f32 %v1110_v56, %v941_v53  ;;  %v2331_v52 = vld [vmem:[%s2947_s19 + $0xf4] sm:$0xf]  ;;  %v2098_v53 = vld [vmem:[%s2947_s19 + $0xf8] sm:$0xf0] }
 0x117   : > { %2545 = vst [vmem:[%s3047_s27 + $0x20] sm:$0xff] %v2405_v55   ;;  %980 = vmatmul.bf16.gmra.mxu0 %v2081_v47  ;;  %1060 = vmatmul.bf16.gmra.mxu2 %v2209_v48  ;;  %v2332_v47 = vld [vmem:[%s2947_s19 + $0xf4] sm:$0xf0]  ;;  %v2224_v48 = vld [vmem:[%s2947_s19 + $0x1f0] sm:$0xf] }
 0x118   : > { %vm1549_vm3 = vcmp.ge.f32.partialorder %v1485_v58, 0.0  ;;  %v1613_v59 = vmul.f32 0.1, %v1485_v58  ;;  %1149 = vmatmul.bf16.gmra.mxu1 %v2085_v49  ;;  %1229 = vmatmul.bf16.gmra.mxu3 %v2213_v54  ;;  %v1454_v3 = vadd.f32 %v3032_v63, %v1111_v60  ;;  %v2364_v49 = vld [vmem:[%s2947_s19 + $0x1f4] sm:$0xf0]  ;;  %v2097_v60 = vor.u32 %v2332_v47, %v2096_v46 }
 0x119   : > { %v2363_v54 = vld [vmem:[%s2947_s19 + $0x1f4] sm:$0xf]  ;;  %v2226_v55 = vld [vmem:[%s2947_s19 + $0x1f8] sm:$0xf0]  ;;  %s2750_s19 = scalar_lea.hbm %s3235_s3, 1024 }
 0x11a   : > { %v1677_v62 = vsel %vm1549_vm3, %v1485_v58, %v1613_v59  ;;  %v1021_v0 = vpop.f32.mrf.mxu2  ;;  %v1582_v12 = vmul.f32 0.1, %v1454_v3  ;;  %vm1518_vm4 = vcmp.ge.f32.partialorder %v1454_v3, 0.0  ;;  %p2752_p10 = scmp.lt.s32.totalorder %s2750_s19, %s2746_s4 }
 0x11b   : > { %v2485_v1 = vpack.c.bf16 %v1677_v62, %v1676_v61  ;;  %v1190_v2 = vpop.f32.mrf.mxu3  ;;  %v2225_v61 = vor.u32 %v2364_v49, %v2224_v48  ;;  %v2101_v62 = vor.u32 %v2331_v52, %v2098_v53 }
 0x11c   : > { %v943_v4 = vpop.f32.mrf.mxu0  ;;  %v1191_v6 = vadd.f32 %v1190_v2, %v1021_v0  ;;  %v1646_v25 = vsel %vm1518_vm4, %v1454_v3, %v1582_v12  ;;  %p2753_p11 = por %p2752_p10, %p2751_p9 }
 0x11d   : > { %2561 = vst [vmem:[%s3047_s27 + $0xa0] sm:$0xff] %v2485_v1   ;;  %v1112_v5 = vpop.f32.mrf.mxu1 }
 0x11e   : > { %v1113_v7 = vadd.f32 %v1112_v5, %v943_v4  ;;  %v1486_v18 = vadd.f32 %v3032_v63, %v1191_v6  ;;  %v2229_v4 = vor.u32 %v2363_v54, %v2226_v55  ;;  %p2754_p12 = pnand %p2753_p11, %p2749_p8 }
 0x120   : > { %v1455_v13 = vadd.f32 %v3032_v63, %v1113_v7  ;;  %v1614_v32 = vmul.f32 0.1, %v1486_v18  ;;  %vm1550_vm6 = vcmp.ge.f32.partialorder %v1486_v18, 0.0 }
 0x122   : > { %vm1519_vm5 = vcmp.ge.f32.partialorder %v1455_v13, 0.0  ;;  %v1583_v19 = vmul.f32 0.1, %v1455_v13  ;;  %v1023_v20 = vpop.f32.mrf.mxu2  ;;  %v1678_v36 = vsel %vm1550_vm6, %v1486_v18, %v1614_v32 }
 0x123   : > { %v1192_v21 = vpop.f32.mrf.mxu3 }
 0x124   : > { %v1647_v26 = vsel %vm1519_vm5, %v1455_v13, %v1583_v19  ;;  %v1193_v27 = vadd.f32 %v1192_v21, %v1023_v20  ;;  %v946_v28 = vpop.f32.mrf.mxu0 }
 0x125   : > { %v2410_v30 = vpack.c.bf16 %v1647_v26, %v1646_v25  ;;  %v1115_v31 = vpop.f32.mrf.mxu1 }
 0x126   : > { %v1487_v33 = vadd.f32 %v3032_v63, %v1193_v27  ;;  %v1116_v35 = vadd.f32 %v1115_v31, %v946_v28 }
 0x127   : > { %2546 = vst [vmem:[%s3047_s27 + $0x28] sm:$0xff] %v2410_v30   ;;  %985 = vmatmul.bf16.gmra.mxu0 %v2089_v22  ;;  %1065 = vmatmul.bf16.gmra.mxu2 %v2217_v23 }
 0x128   : > { %vm1551_vm7 = vcmp.ge.f32.partialorder %v1487_v33, 0.0  ;;  %v1615_v34 = vmul.f32 0.1, %v1487_v33  ;;  %1154 = vmatmul.bf16.gmra.mxu1 %v2093_v24  ;;  %1234 = vmatmul.bf16.gmra.mxu3 %v2221_v29  ;;  %v1456_v41 = vadd.f32 %v3032_v63, %v1116_v35 }
 0x12a   : > { %v1679_v37 = vsel %vm1551_vm7, %v1487_v33, %v1615_v34  ;;  %v1026_v38 = vpop.f32.mrf.mxu2  ;;  %v1584_v50 = vmul.f32 0.1, %v1456_v41  ;;  %vm1520_vm8 = vcmp.ge.f32.partialorder %v1456_v41, 0.0 }
 0x12b   : > { %v2490_v39 = vpack.c.bf16 %v1679_v37, %v1678_v36  ;;  %v1195_v40 = vpop.f32.mrf.mxu3 }
 0x12c   : > { %v948_v42 = vpop.f32.mrf.mxu0  ;;  %v1196_v44 = vadd.f32 %v1195_v40, %v1026_v38  ;;  %v1648_v0 = vsel %vm1520_vm8, %v1456_v41, %v1584_v50 }
 0x12d   : > { %2562 = vst [vmem:[%s3047_s27 + $0xa8] sm:$0xff] %v2490_v39   ;;  %v1117_v43 = vpop.f32.mrf.mxu1 }
 0x12e   : > { %v1118_v45 = vadd.f32 %v1117_v43, %v948_v42  ;;  %v1488_v56 = vadd.f32 %v3032_v63, %v1196_v44 }
 0x130   : > { %v1457_v51 = vadd.f32 %v3032_v63, %v1118_v45  ;;  %v1616_v7 = vmul.f32 0.1, %v1488_v56  ;;  %vm1552_vm10 = vcmp.ge.f32.partialorder %v1488_v56, 0.0 }
 0x132   : > { %vm1521_vm9 = vcmp.ge.f32.partialorder %v1457_v51, 0.0  ;;  %v1585_v57 = vmul.f32 0.1, %v1457_v51  ;;  %v1028_v58 = vpop.f32.mrf.mxu2  ;;  %v1680_v11 = vsel %vm1552_vm10, %v1488_v56, %v1616_v7 }
 0x133   : > { %v1197_v59 = vpop.f32.mrf.mxu3 }
 0x134   : > { %v1649_v1 = vsel %vm1521_vm9, %v1457_v51, %v1585_v57  ;;  %v1198_v2 = vadd.f32 %v1197_v59, %v1028_v58  ;;  %v951_v3 = vpop.f32.mrf.mxu0 }
 0x135   : > { %v2415_v5 = vpack.c.bf16 %v1649_v1, %v1648_v0  ;;  %v1120_v6 = vpop.f32.mrf.mxu1 }
 0x136   : > { %v1489_v8 = vadd.f32 %v3032_v63, %v1198_v2  ;;  %v1121_v10 = vadd.f32 %v1120_v6, %v951_v3 }
 0x137   : > { %2547 = vst [vmem:[%s3047_s27 + $0x30] sm:$0xff] %v2415_v5   ;;  %990 = vmatmul.bf16.gmra.mxu0 %v2097_v60  ;;  %1070 = vmatmul.bf16.gmra.mxu2 %v2225_v61 }
 0x138   : > { %vm1553_vm11 = vcmp.ge.f32.partialorder %v1489_v8, 0.0  ;;  %v1617_v9 = vmul.f32 0.1, %v1489_v8  ;;  %1159 = vmatmul.bf16.gmra.mxu1 %v2101_v62  ;;  %1239 = vmatmul.bf16.gmra.mxu3 %v2229_v4  ;;  %v1458_v16 = vadd.f32 %v3032_v63, %v1121_v10 }
 0x13a   : > { %v1681_v12 = vsel %vm1553_vm11, %v1489_v8, %v1617_v9  ;;  %v1031_v13 = vpop.f32.mrf.mxu2  ;;  %v1586_v21 = vmul.f32 0.1, %v1458_v16  ;;  %vm1522_vm12 = vcmp.ge.f32.partialorder %v1458_v16, 0.0 }
 0x13b   : > { %v2495_v14 = vpack.c.bf16 %v1681_v12, %v1680_v11  ;;  %v1200_v15 = vpop.f32.mrf.mxu3 }
 0x13c   : > { %v953_v17 = vpop.f32.mrf.mxu0  ;;  %v1201_v19 = vadd.f32 %v1200_v15, %v1031_v13  ;;  %v1650_v27 = vsel %vm1522_vm12, %v1458_v16, %v1586_v21 }
 0x13d   : > { %2563 = vst [vmem:[%s3047_s27 + $0xb0] sm:$0xff] %v2495_v14   ;;  %v1122_v18 = vpop.f32.mrf.mxu1 }
 0x13e   : > { %v1123_v20 = vadd.f32 %v1122_v18, %v953_v17  ;;  %v1490_v23 = vadd.f32 %v3032_v63, %v1201_v19 }
 0x140   : > { %v1459_v22 = vadd.f32 %v3032_v63, %v1123_v20  ;;  %v1618_v33 = vmul.f32 0.1, %v1490_v23  ;;  %vm1554_vm14 = vcmp.ge.f32.partialorder %v1490_v23, 0.0 }
 0x142   : > { %vm1523_vm13 = vcmp.ge.f32.partialorder %v1459_v22, 0.0  ;;  %v1587_v24 = vmul.f32 0.1, %v1459_v22  ;;  %v1033_v25 = vpop.f32.mrf.mxu2  ;;  %v1682_v37 = vsel %vm1554_vm14, %v1490_v23, %v1618_v33 }
 0x143   : > { %v1202_v26 = vpop.f32.mrf.mxu3 }
 0x144   : > { %v1651_v28 = vsel %vm1523_vm13, %v1459_v22, %v1587_v24  ;;  %v1203_v29 = vadd.f32 %v1202_v26, %v1033_v25  ;;  %v956_v30 = vpop.f32.mrf.mxu0 }
 0x145   : > { %v2420_v31 = vpack.c.bf16 %v1651_v28, %v1650_v27  ;;  %v1125_v32 = vpop.f32.mrf.mxu1 }
 0x146   : > { %v1491_v34 = vadd.f32 %v3032_v63, %v1203_v29  ;;  %v1126_v36 = vadd.f32 %v1125_v32, %v956_v30 }
 0x147   : > { %2548 = vst [vmem:[%s3047_s27 + $0x38] sm:$0xff] %v2420_v31  }
 0x148   : > { %vm1555_vm15 = vcmp.ge.f32.partialorder %v1491_v34, 0.0  ;;  %v1619_v35 = vmul.f32 0.1, %v1491_v34  ;;  %v1460_v42 = vadd.f32 %v3032_v63, %v1126_v36 }
 0x14a   : > { %v1683_v38 = vsel %vm1555_vm15, %v1491_v34, %v1619_v35  ;;  %v1036_v39 = vpop.f32.mrf.mxu2  ;;  %v1588_v47 = vmul.f32 0.1, %v1460_v42  ;;  %vm1524_vm0 = vcmp.ge.f32.partialorder %v1460_v42, 0.0 }
 0x14b   : > { %v2500_v40 = vpack.c.bf16 %v1683_v38, %v1682_v37  ;;  %v1205_v41 = vpop.f32.mrf.mxu3 }
 0x14c   : > { %v958_v43 = vpop.f32.mrf.mxu0  ;;  %v1206_v45 = vadd.f32 %v1205_v41, %v1036_v39  ;;  %v1652_v53 = vsel %vm1524_vm0, %v1460_v42, %v1588_v47 }
 0x14d   : > { %2564 = vst [vmem:[%s3047_s27 + $0xb8] sm:$0xff] %v2500_v40   ;;  %v1127_v44 = vpop.f32.mrf.mxu1 }
 0x14e   : > { %v1128_v46 = vadd.f32 %v1127_v44, %v958_v43  ;;  %v1492_v49 = vadd.f32 %v3032_v63, %v1206_v45 }
 0x150   : > { %v1461_v48 = vadd.f32 %v3032_v63, %v1128_v46  ;;  %v1620_v59 = vmul.f32 0.1, %v1492_v49  ;;  %vm1556_vm2 = vcmp.ge.f32.partialorder %v1492_v49, 0.0 }
 0x152   : > { %vm1525_vm1 = vcmp.ge.f32.partialorder %v1461_v48, 0.0  ;;  %v1589_v50 = vmul.f32 0.1, %v1461_v48  ;;  %v1038_v51 = vpop.f32.mrf.mxu2  ;;  %v1684_v0 = vsel %vm1556_vm2, %v1492_v49, %v1620_v59 }
 0x153   : > { %v1207_v52 = vpop.f32.mrf.mxu3 }
 0x154   : > { %v1653_v54 = vsel %vm1525_vm1, %v1461_v48, %v1589_v50  ;;  %v1208_v55 = vadd.f32 %v1207_v52, %v1038_v51  ;;  %v961_v56 = vpop.f32.mrf.mxu0 }
 0x155   : > { %v2425_v57 = vpack.c.bf16 %v1653_v54, %v1652_v53  ;;  %v1130_v58 = vpop.f32.mrf.mxu1 }
 0x156   : > { %v1493_v60 = vadd.f32 %v3032_v63, %v1208_v55  ;;  %v1131_v62 = vadd.f32 %v1130_v58, %v961_v56 }
 0x157   : > { %2549 = vst [vmem:[%s3047_s27 + $0x40] sm:$0xff] %v2425_v57  }
 0x158   : > { %vm1557_vm3 = vcmp.ge.f32.partialorder %v1493_v60, 0.0  ;;  %v1621_v61 = vmul.f32 0.1, %v1493_v60  ;;  %v1462_v5 = vadd.f32 %v3032_v63, %v1131_v62 }
 0x15a   : > { %v1685_v1 = vsel %vm1557_vm3, %v1493_v60, %v1621_v61  ;;  %v1041_v2 = vpop.f32.mrf.mxu2  ;;  %v1590_v10 = vmul.f32 0.1, %v1462_v5  ;;  %vm1526_vm4 = vcmp.ge.f32.partialorder %v1462_v5, 0.0 }
 0x15b   : > { %v2505_v3 = vpack.c.bf16 %v1685_v1, %v1684_v0  ;;  %v1210_v4 = vpop.f32.mrf.mxu3 }
 0x15c   : > { %v963_v6 = vpop.f32.mrf.mxu0  ;;  %v1211_v8 = vadd.f32 %v1210_v4, %v1041_v2  ;;  %v1654_v16 = vsel %vm1526_vm4, %v1462_v5, %v1590_v10 }
 0x15d   : > { %2565 = vst [vmem:[%s3047_s27 + $0xc0] sm:$0xff] %v2505_v3   ;;  %v1132_v7 = vpop.f32.mrf.mxu1 }
 0x15e   : > { %v1133_v9 = vadd.f32 %v1132_v7, %v963_v6  ;;  %v1494_v12 = vadd.f32 %v3032_v63, %v1211_v8 }
 0x160   : > { %v1463_v11 = vadd.f32 %v3032_v63, %v1133_v9  ;;  %v1622_v22 = vmul.f32 0.1, %v1494_v12  ;;  %vm1558_vm6 = vcmp.ge.f32.partialorder %v1494_v12, 0.0 }
 0x162   : > { %vm1527_vm5 = vcmp.ge.f32.partialorder %v1463_v11, 0.0  ;;  %v1591_v13 = vmul.f32 0.1, %v1463_v11  ;;  %v1043_v14 = vpop.f32.mrf.mxu2  ;;  %v1686_v26 = vsel %vm1558_vm6, %v1494_v12, %v1622_v22 }
 0x163   : > { %v1212_v15 = vpop.f32.mrf.mxu3 }
 0x164   : > { %v1655_v17 = vsel %vm1527_vm5, %v1463_v11, %v1591_v13  ;;  %v1213_v18 = vadd.f32 %v1212_v15, %v1043_v14  ;;  %v966_v19 = vpop.f32.mrf.mxu0 }
 0x165   : > { %v2430_v20 = vpack.c.bf16 %v1655_v17, %v1654_v16  ;;  %v1135_v21 = vpop.f32.mrf.mxu1 }
 0x166   : > { %v1495_v23 = vadd.f32 %v3032_v63, %v1213_v18  ;;  %v1136_v25 = vadd.f32 %v1135_v21, %v966_v19 }
 0x167   : > { %2550 = vst [vmem:[%s3047_s27 + $0x48] sm:$0xff] %v2430_v20  }
 0x168   : > { %vm1559_vm7 = vcmp.ge.f32.partialorder %v1495_v23, 0.0  ;;  %v1623_v24 = vmul.f32 0.1, %v1495_v23  ;;  %v1464_v31 = vadd.f32 %v3032_v63, %v1136_v25 }
 0x16a   : > { %v1687_v27 = vsel %vm1559_vm7, %v1495_v23, %v1623_v24  ;;  %v1046_v28 = vpop.f32.mrf.mxu2  ;;  %v1592_v36 = vmul.f32 0.1, %v1464_v31  ;;  %vm1528_vm8 = vcmp.ge.f32.partialorder %v1464_v31, 0.0 }
 0x16b   : > { %v2510_v29 = vpack.c.bf16 %v1687_v27, %v1686_v26  ;;  %v1215_v30 = vpop.f32.mrf.mxu3 }
 0x16c   : > { %v968_v32 = vpop.f32.mrf.mxu0  ;;  %v1216_v34 = vadd.f32 %v1215_v30, %v1046_v28  ;;  %v1656_v42 = vsel %vm1528_vm8, %v1464_v31, %v1592_v36 }
 0x16d   : > { %2566 = vst [vmem:[%s3047_s27 + $0xc8] sm:$0xff] %v2510_v29   ;;  %v1137_v33 = vpop.f32.mrf.mxu1 }
 0x16e   : > { %v1138_v35 = vadd.f32 %v1137_v33, %v968_v32  ;;  %v1496_v38 = vadd.f32 %v3032_v63, %v1216_v34 }
 0x170   : > { %v1465_v37 = vadd.f32 %v3032_v63, %v1138_v35  ;;  %v1624_v48 = vmul.f32 0.1, %v1496_v38  ;;  %vm1560_vm10 = vcmp.ge.f32.partialorder %v1496_v38, 0.0 }
 0x172   : > { %vm1529_vm9 = vcmp.ge.f32.partialorder %v1465_v37, 0.0  ;;  %v1593_v39 = vmul.f32 0.1, %v1465_v37  ;;  %v1048_v40 = vpop.f32.mrf.mxu2  ;;  %v1688_v52 = vsel %vm1560_vm10, %v1496_v38, %v1624_v48  ;;  %v3171_v38 = vld [vmem:[%s3234_s2] ss:$0 sm:$0xff] }
 0x173   : > { %v1217_v41 = vpop.f32.mrf.mxu3 }
 0x174   : > { %v1657_v43 = vsel %vm1529_vm9, %v1465_v37, %v1593_v39  ;;  %v1218_v44 = vadd.f32 %v1217_v41, %v1048_v40  ;;  %v971_v45 = vpop.f32.mrf.mxu0 }
 0x175   : > { %v2435_v46 = vpack.c.bf16 %v1657_v43, %v1656_v42  ;;  %v1140_v47 = vpop.f32.mrf.mxu1 }
 0x176   : > { %v1497_v49 = vadd.f32 %v3032_v63, %v1218_v44  ;;  %v1141_v51 = vadd.f32 %v1140_v47, %v971_v45 }
 0x177   : > { %2551 = vst [vmem:[%s3047_s27 + $0x50] sm:$0xff] %v2435_v46  }
 0x178   : > { %vm1561_vm11 = vcmp.ge.f32.partialorder %v1497_v49, 0.0  ;;  %v1625_v50 = vmul.f32 0.1, %v1497_v49  ;;  %v1466_v57 = vadd.f32 %v3032_v63, %v1141_v51 }
 0x17a   : > { %v1689_v53 = vsel %vm1561_vm11, %v1497_v49, %v1625_v50  ;;  %v1051_v54 = vpop.f32.mrf.mxu2  ;;  %v1594_v62 = vmul.f32 0.1, %v1466_v57  ;;  %vm1530_vm12 = vcmp.ge.f32.partialorder %v1466_v57, 0.0 }
 0x17b   : > { %v2515_v55 = vpack.c.bf16 %v1689_v53, %v1688_v52  ;;  %v1220_v56 = vpop.f32.mrf.mxu3 }
 0x17c   : > { %v973_v58 = vpop.f32.mrf.mxu0  ;;  %v1221_v60 = vadd.f32 %v1220_v56, %v1051_v54  ;;  %v1658_v5 = vsel %vm1530_vm12, %v1466_v57, %v1594_v62 }
 0x17d   : > { %2567 = vst [vmem:[%s3047_s27 + $0xd0] sm:$0xff] %v2515_v55   ;;  %v1142_v59 = vpop.f32.mrf.mxu1 }
 0x17e   : > { %v1143_v61 = vadd.f32 %v1142_v59, %v973_v58  ;;  %v1498_v1 = vadd.f32 %v3032_v63, %v1221_v60 }
 0x180   : > { %v1467_v0 = vadd.f32 %v3032_v63, %v1143_v61  ;;  %v1626_v11 = vmul.f32 0.1, %v1498_v1  ;;  %vm1562_vm14 = vcmp.ge.f32.partialorder %v1498_v1, 0.0 }
 0x182   : > { %vm1531_vm13 = vcmp.ge.f32.partialorder %v1467_v0, 0.0  ;;  %v1595_v2 = vmul.f32 0.1, %v1467_v0  ;;  %v1053_v3 = vpop.f32.mrf.mxu2  ;;  %v1690_v15 = vsel %vm1562_vm14, %v1498_v1, %v1626_v11 }
 0x183   : > { %v1222_v4 = vpop.f32.mrf.mxu3 }
 0x184   : > { %v1659_v6 = vsel %vm1531_vm13, %v1467_v0, %v1595_v2  ;;  %v1223_v7 = vadd.f32 %v1222_v4, %v1053_v3  ;;  %v976_v8 = vpop.f32.mrf.mxu0 }
 0x185   : > { %v2440_v9 = vpack.c.bf16 %v1659_v6, %v1658_v5  ;;  %v1145_v10 = vpop.f32.mrf.mxu1 }
 0x186   : > { %v1499_v12 = vadd.f32 %v3032_v63, %v1223_v7  ;;  %v1146_v14 = vadd.f32 %v1145_v10, %v976_v8 }
 0x187   : > { %2552 = vst [vmem:[%s3047_s27 + $0x58] sm:$0xff] %v2440_v9  }
 0x188   : > { %vm1563_vm15 = vcmp.ge.f32.partialorder %v1499_v12, 0.0  ;;  %v1627_v13 = vmul.f32 0.1, %v1499_v12  ;;  %v1468_v20 = vadd.f32 %v3032_v63, %v1146_v14 }
 0x18a   : > { %v1691_v16 = vsel %vm1563_vm15, %v1499_v12, %v1627_v13  ;;  %v1056_v17 = vpop.f32.mrf.mxu2  ;;  %v1596_v25 = vmul.f32 0.1, %v1468_v20  ;;  %vm1532_vm0 = vcmp.ge.f32.partialorder %v1468_v20, 0.0 }
 0x18b   : > { %v2520_v18 = vpack.c.bf16 %v1691_v16, %v1690_v15  ;;  %v1225_v19 = vpop.f32.mrf.mxu3 }
 0x18c   : > { %v978_v21 = vpop.f32.mrf.mxu0  ;;  %v1226_v23 = vadd.f32 %v1225_v19, %v1056_v17  ;;  %v1660_v31 = vsel %vm1532_vm0, %v1468_v20, %v1596_v25 }
 0x18d   : > { %2568 = vst [vmem:[%s3047_s27 + $0xd8] sm:$0xff] %v2520_v18   ;;  %v1147_v22 = vpop.f32.mrf.mxu1 }
 0x18e   : > { %v1148_v24 = vadd.f32 %v1147_v22, %v978_v21  ;;  %v1500_v27 = vadd.f32 %v3032_v63, %v1226_v23 }
 0x190   : > { %v1469_v26 = vadd.f32 %v3032_v63, %v1148_v24  ;;  %v1628_v37 = vmul.f32 0.1, %v1500_v27  ;;  %vm1564_vm2 = vcmp.ge.f32.partialorder %v1500_v27, 0.0 }
 0x192   : > { %vm1533_vm1 = vcmp.ge.f32.partialorder %v1469_v26, 0.0  ;;  %v1597_v28 = vmul.f32 0.1, %v1469_v26  ;;  %v1058_v29 = vpop.f32.mrf.mxu2  ;;  %v1692_v41 = vsel %vm1564_vm2, %v1500_v27, %v1628_v37 }
 0x193   : > { %v1227_v30 = vpop.f32.mrf.mxu3 }
 0x194   : > { %v1661_v32 = vsel %vm1533_vm1, %v1469_v26, %v1597_v28  ;;  %v1228_v33 = vadd.f32 %v1227_v30, %v1058_v29  ;;  %v981_v34 = vpop.f32.mrf.mxu0 }
 0x195   : > { %v2445_v35 = vpack.c.bf16 %v1661_v32, %v1660_v31  ;;  %v1150_v36 = vpop.f32.mrf.mxu1 }
 0x196   : > { %v1501_v39 = vadd.f32 %v3171_v38, %v1228_v33  ;;  %v1151_v40 = vadd.f32 %v1150_v36, %v981_v34 }
 0x197   : > { %2553 = vst [vmem:[%s3047_s27 + $0x60] sm:$0xff] %v2445_v35  }
 0x198   : > { %vm1565_vm3 = vcmp.ge.f32.partialorder %v1501_v39, 0.0  ;;  %v1629_v63 = vmul.f32 0.1, %v1501_v39  ;;  %v1470_v46 = vadd.f32 %v3171_v38, %v1151_v40 }
 0x19a   : > { %v1693_v42 = vsel %vm1565_vm3, %v1501_v39, %v1629_v63  ;;  %v1061_v43 = vpop.f32.mrf.mxu2  ;;  %v1598_v51 = vmul.f32 0.1, %v1470_v46  ;;  %vm1534_vm4 = vcmp.ge.f32.partialorder %v1470_v46, 0.0 }
 0x19b   : > { %v2525_v44 = vpack.c.bf16 %v1693_v42, %v1692_v41  ;;  %v1230_v45 = vpop.f32.mrf.mxu3 }
 0x19c   : > { %v983_v47 = vpop.f32.mrf.mxu0  ;;  %v1231_v49 = vadd.f32 %v1230_v45, %v1061_v43  ;;  %v1662_v57 = vsel %vm1534_vm4, %v1470_v46, %v1598_v51 }
 0x19d   : > { %2569 = vst [vmem:[%s3047_s27 + $0xe0] sm:$0xff] %v2525_v44   ;;  %v1152_v48 = vpop.f32.mrf.mxu1 }
 0x19e   : > { %v1153_v50 = vadd.f32 %v1152_v48, %v983_v47  ;;  %v1502_v53 = vadd.f32 %v3171_v38, %v1231_v49 }
 0x1a0   : > { %v1471_v52 = vadd.f32 %v3171_v38, %v1153_v50  ;;  %v1630_v0 = vmul.f32 0.1, %v1502_v53  ;;  %vm1566_vm6 = vcmp.ge.f32.partialorder %v1502_v53, 0.0 }
 0x1a2   : > { %vm1535_vm5 = vcmp.ge.f32.partialorder %v1471_v52, 0.0  ;;  %v1599_v54 = vmul.f32 0.1, %v1471_v52  ;;  %v1063_v55 = vpop.f32.mrf.mxu2  ;;  %v1694_v4 = vsel %vm1566_vm6, %v1502_v53, %v1630_v0 }
 0x1a3   : > { %v1232_v56 = vpop.f32.mrf.mxu3 }
 0x1a4   : > { %v1663_v58 = vsel %vm1535_vm5, %v1471_v52, %v1599_v54  ;;  %v1233_v59 = vadd.f32 %v1232_v56, %v1063_v55  ;;  %v986_v60 = vpop.f32.mrf.mxu0 }
 0x1a5   : > { %v2450_v61 = vpack.c.bf16 %v1663_v58, %v1662_v57  ;;  %v1155_v62 = vpop.f32.mrf.mxu1 }
 0x1a6   : > { %v1503_v1 = vadd.f32 %v3171_v38, %v1233_v59  ;;  %v1156_v3 = vadd.f32 %v1155_v62, %v986_v60 }
 0x1a7   : > { %2554 = vst [vmem:[%s3047_s27 + $0x68] sm:$0xff] %v2450_v61  }
 0x1a8   : > { %vm1567_vm7 = vcmp.ge.f32.partialorder %v1503_v1, 0.0  ;;  %v1631_v2 = vmul.f32 0.1, %v1503_v1  ;;  %v1472_v9 = vadd.f32 %v3171_v38, %v1156_v3 }
 0x1aa   : > { %v1695_v5 = vsel %vm1567_vm7, %v1503_v1, %v1631_v2  ;;  %v1066_v6 = vpop.f32.mrf.mxu2  ;;  %v1600_v14 = vmul.f32 0.1, %v1472_v9  ;;  %vm1536_vm8 = vcmp.ge.f32.partialorder %v1472_v9, 0.0 }
 0x1ab   : > { %v2530_v7 = vpack.c.bf16 %v1695_v5, %v1694_v4  ;;  %v1235_v8 = vpop.f32.mrf.mxu3 }
 0x1ac   : > { %v988_v10 = vpop.f32.mrf.mxu0  ;;  %v1236_v12 = vadd.f32 %v1235_v8, %v1066_v6  ;;  %v1664_v20 = vsel %vm1536_vm8, %v1472_v9, %v1600_v14 }
 0x1ad   : > { %2570 = vst [vmem:[%s3047_s27 + $0xe8] sm:$0xff] %v2530_v7   ;;  %v1157_v11 = vpop.f32.mrf.mxu1 }
 0x1ae   : > { %v1158_v13 = vadd.f32 %v1157_v11, %v988_v10  ;;  %v1504_v16 = vadd.f32 %v3171_v38, %v1236_v12 }
 0x1b0   : > { %v1473_v15 = vadd.f32 %v3171_v38, %v1158_v13  ;;  %v1632_v26 = vmul.f32 0.1, %v1504_v16  ;;  %vm1568_vm10 = vcmp.ge.f32.partialorder %v1504_v16, 0.0 }
 0x1b2   : > { %vm1537_vm9 = vcmp.ge.f32.partialorder %v1473_v15, 0.0  ;;  %v1601_v17 = vmul.f32 0.1, %v1473_v15  ;;  %v1068_v18 = vpop.f32.mrf.mxu2  ;;  %v1696_v30 = vsel %vm1568_vm10, %v1504_v16, %v1632_v26 }
 0x1b3   : > { %v1237_v19 = vpop.f32.mrf.mxu3 }
 0x1b4   : > { %v1665_v21 = vsel %vm1537_vm9, %v1473_v15, %v1601_v17  ;;  %v1238_v22 = vadd.f32 %v1237_v19, %v1068_v18  ;;  %v991_v23 = vpop.f32.mrf.mxu0 }
 0x1b5   : > { %v2455_v24 = vpack.c.bf16 %v1665_v21, %v1664_v20  ;;  %v1160_v25 = vpop.f32.mrf.mxu1 }
 0x1b6   : > { %v1505_v27 = vadd.f32 %v3171_v38, %v1238_v22  ;;  %v1161_v29 = vadd.f32 %v1160_v25, %v991_v23 }
 0x1b7   : > { %2555 = vst [vmem:[%s3047_s27 + $0x70] sm:$0xff] %v2455_v24  }
 0x1b8   : > { %vm1569_vm11 = vcmp.ge.f32.partialorder %v1505_v27, 0.0  ;;  %v1633_v28 = vmul.f32 0.1, %v1505_v27  ;;  %v1474_v35 = vadd.f32 %v3171_v38, %v1161_v29 }
 0x1ba   : > { %v1697_v31 = vsel %vm1569_vm11, %v1505_v27, %v1633_v28  ;;  %v1071_v32 = vpop.f32.mrf.mxu2  ;;  %v1602_v40 = vmul.f32 0.1, %v1474_v35  ;;  %vm1538_vm12 = vcmp.ge.f32.partialorder %v1474_v35, 0.0 }
 0x1bb   : > { %v2535_v33 = vpack.c.bf16 %v1697_v31, %v1696_v30  ;;  %v1240_v34 = vpop.f32.mrf.mxu3 }
 0x1bc   : > { %v993_v36 = vpop.f32.mrf.mxu0  ;;  %v1241_v39 = vadd.f32 %v1240_v34, %v1071_v32  ;;  %v1666_v46 = vsel %vm1538_vm12, %v1474_v35, %v1602_v40 }
 0x1bd   : > { %2571 = vst [vmem:[%s3047_s27 + $0xf0] sm:$0xff] %v2535_v33   ;;  %v1162_v37 = vpop.f32.mrf.mxu1 }
 0x1be   : > { %v1163_v63 = vadd.f32 %v1162_v37, %v993_v36  ;;  %v1506_v42 = vadd.f32 %v3171_v38, %v1241_v39 }
 0x1c0   : > { %v1475_v41 = vadd.f32 %v3171_v38, %v1163_v63  ;;  %v1634_v50 = vmul.f32 0.1, %v1506_v42  ;;  %vm1570_vm14 = vcmp.ge.f32.partialorder %v1506_v42, 0.0 }
 0x1c2   : > { %vm1539_vm13 = vcmp.ge.f32.partialorder %v1475_v41, 0.0  ;;  %v1603_v43 = vmul.f32 0.1, %v1475_v41  ;;  %v1073_v44 = vpop.f32.mrf.mxu2  ;;  %v1698_v53 = vsel %vm1570_vm14, %v1506_v42, %v1634_v50 }
 0x1c3   : > { %v1242_v45 = vpop.f32.mrf.mxu3 }
 0x1c4   : > { %v1667_v47 = vsel %vm1539_vm13, %v1475_v41, %v1603_v43  ;;  %v1243_v48 = vadd.f32 %v1242_v45, %v1073_v44 }
 0x1c5   : > { %v2460_v49 = vpack.c.bf16 %v1667_v47, %v1666_v46 }
 0x1c6   : > { %v1507_v51 = vadd.f32 %v3171_v38, %v1243_v48 }
 0x1c7   : > { %2556 = vst [vmem:[%s3047_s27 + $0x78] sm:$0xff] %v2460_v49  }
 0x1c8   : > { %vm1571_vm15 = vcmp.ge.f32.partialorder %v1507_v51, 0.0  ;;  %v1635_v52 = vmul.f32 0.1, %v1507_v51 }
 0x1ca   : > { %v1699_v54 = vsel %vm1571_vm15, %v1507_v51, %v1635_v52 }
 0x1cb   : > { %v2540_v55 = vpack.c.bf16 %v1699_v54, %v1698_v53 }
 0x1cd   : > { %2572 = vst [vmem:[%s3047_s27 + $0xf8] sm:$0xff] %v2540_v55  }
 0x1ce   : > { %2757 = shalt.err (!%p2754_p12)
}
 0x1cf   : > { %s2823_s6 = smov 64   ;;  %s2824_s22 = smov 4  }
 0x1d0   : > { %2595 = dma.vmem_to_hbm [thread:$0]  (%p2923_p3), %s1843_s15, 4096, %s1845_s29, %s1829_s21, %s2823_s6, %s2823_s6, %s2824_s22  }
 0x1d1 PF: > { %p2612_p13 = scmp.ge.s32.totalorder %s2816_s17, 2  ;;  %s1859_s27 = sand.u32 1, %s2796_s12  }
 0x1d2   : > { %s1860_s7 = scalar_lea.sflag [#allocation5], %s1859_s27 }
 0x1d3   : > { %p2606_p0 = pnand %p2612_p13, %p2894_p6 }
 0x1d5   : > { %p2607_p5 = pneg %p2606_p0 }
 0x1d7   : > { %2791 = dma.done.wait (%p2607_p5), %s1860_s7, 4096  }
 0x1d8   : > { %2793 = vsyncadd (%p2607_p5), %s1860_s7, 4294963200  ;;  %s20_s17 = sadd.s32 1, %s2816_s17   ;;  %s3245_s12 = smov %s2800_s13 }
 0x1d9   : > { %p17_p7 = scmp.ge.s32.totalorder %s20_s17, 6   ;;  %s3246_s13 = smov %s2804_s14 }
 0x1da   : > { %s3247_s14 = smov %s2932_s18  ;;  %s3248_s15 = smov %s2812_s16 }
 0x1db   : > { %s3249_s16 = smov %s3251_s5  ;;  %19 = sbr.rel (!%p17_p7) target bundleno = 9 (0x9), region = 93 }
 0x1e0   :  { %1866 = vsyncpa [#allocation4], 1 }
 0x1e1   :  { %1868 = vsyncpa [#allocation4 + $0x1], 1 }
 0x1e2   :  { %1869 = vsyncpa [#allocation7], 1 }
 0x1e3   :  { %1870 = vsyncpa [#allocation5], 1 }
 0x1e4   :  { %1872 = vsyncpa [#allocation5 + $0x1], 1 }

</bundles_post_ra>
